<compile_context>
chip_gen: v6e
topology: v6e:2x2x1
jax: 0.10.0
libtpu: 0.0.40
codegen_flags: <defaults>
</compile_context>

<pallas_src>
import jax
import jax.numpy as jnp
from jax.experimental import pallas as pl
from jax.experimental.pallas import tpu as pltpu


def hhead_kernel(x_ref, w_ref, b_ref, o_ref, acc_ref):
    """Weighted channel reduction with an f32 accumulator.

    x_ref:   (tb, tc, P) VMEM tile of the NCHW input (channels on sublanes,
             spatial on lanes) — no host-side transpose needed.
    w_ref:   (tc, 1) VMEM slice of the conv weight (channel-major).
    b_ref:   (1, 1) SMEM scalar bias.
    o_ref:   (tb, P) output block (same block revisited across channel steps).
    acc_ref: (tb, P) f32 VMEM accumulator scratch.
    """
    c = pl.program_id(1)

    @pl.when(c == 0)
    def _init():
        acc_ref[...] = jnp.zeros_like(acc_ref)

    x = x_ref[...].astype(jnp.float32)          # (tb, tc, P)
    w = w_ref[...].astype(jnp.float32)          # (tc, 1)
    # out[b, p] += sum_c w[c] * x[b, c, p]  (VPU multiply + sublane reduce).
    acc_ref[...] += jnp.sum(x * w[None, :, :], axis=1)

    @pl.when(c == pl.num_programs(1) - 1)
    def _finalize():
        o_ref[...] = (acc_ref[...] + b_ref[0, 0]).astype(o_ref.dtype)


def _choose_tiles(N, C, P, itemsize, block_budget_bytes=2 * 1024 * 1024):
    """Pick (tb, tc) = (batch-row tile, channel tile).

    Keeps the x block (tb*tc*P*itemsize) under ~2 MiB so that the
    double-buffered input plus the in-kernel product temporary stays well
    inside the default scoped-VMEM limit on v5e/v6e/v7x, while each grid step
    still moves >= ~1 MiB whenever the data allows (the measured knee for
    amortizing per-step pipeline overhead on mem-bound kernels).
    """
    min_tb = N if N < 8 else 8
    # Channel (reduction) tile: start at full C; halve while it stays a
    # divisor of C and a multiple of 8 (sublane tiling) until the minimal
    # batch tile fits the budget.
    tc = C
    while (min_tb * tc * P * itemsize > block_budget_bytes
           and tc > 128 and tc % 2 == 0 and (tc // 2) % 8 == 0):
        tc //= 2
    # Batch tile: as many rows as the budget allows; multiple of 8 (sublane
    # tiling of the (tb, P) output block) unless it covers all of N.
    tb_cap = block_budget_bytes // (tc * P * itemsize)
    if tb_cap >= N:
        tb = N
    elif tb_cap >= 8:
        tb = (tb_cap // 8) * 8
    else:
        tb = min_tb
    return tb, tc


def hhead_forward(x_nchw, weight, bias):
    """x_nchw: (N, 1024, H, W); weight: (1, 1024, 1, 1); bias: (1,).

    Returns the flattened conv output of length N*H*W (torch.flatten order:
    n-major, then h, then w).
    """
    N, C, H, W = x_nchw.shape
    P = H * W

    # Pure views — no HBM traffic before the kernel.
    x3 = x_nchw.reshape(N, C, P)                       # channels on sublanes
    w2 = weight.reshape(C, 1).astype(jnp.float32)      # channel-major weight
    b2 = bias.reshape(1, 1).astype(jnp.float32)

    tb, tc = _choose_tiles(N, C, P, x3.dtype.itemsize)
    grid = (pl.cdiv(N, tb), C // tc)                   # reduction axis last

    out = pl.pallas_call(
        hhead_kernel,
        out_shape=jax.ShapeDtypeStruct((N, P), x_nchw.dtype),
        grid_spec=pltpu.PrefetchScalarGridSpec(
            num_scalar_prefetch=0,
            grid=grid,
            in_specs=[
                pl.BlockSpec((tb, tc, P), lambda b, c: (b, c, 0)),   # x tile
                pl.BlockSpec((tc, 1), lambda b, c: (c, 0)),          # weights
                pl.BlockSpec((1, 1), lambda b, c: (0, 0),
                             memory_space=pltpu.SMEM),               # bias
            ],
            out_specs=pl.BlockSpec((tb, P), lambda b, c: (b, 0)),
            scratch_shapes=[pltpu.VMEM((tb, P), jnp.float32)],
        ),
        compiler_params=pltpu.CompilerParams(
            dimension_semantics=("parallel", "arbitrary")),
    )(x3, w2, b2)

    # torch.flatten over the (N, 1, H, W) conv output -> 1-D of length N*H*W.
    return out.reshape(-1)


if __name__ == "__main__":
    key = jax.random.PRNGKey(0)
    k_x, k_w, k_b = jax.random.split(key, 3)

    # Small shapes consistent with the module: Conv2d requires 1024 in-channels.
    N, C, H, W = 2, 1024, 4, 4
    x = jax.random.normal(k_x, (N, C, H, W), dtype=jnp.float32)

    # Deterministic synthetic parameters (shapes from nn.Conv2d(1024, 1, 1)).
    weight = 0.02 * jax.random.normal(k_w, (1, C, 1, 1), dtype=jnp.float32)
    bias = 0.02 * jax.random.normal(k_b, (1,), dtype=jnp.float32)

    out = hhead_forward(x, weight, bias)
    out = jax.block_until_ready(out)

    # Reference check (plain JAX) for the same semantics.
    ref = (jnp.einsum("nchw,c->nhw", x, weight.reshape(C)) + bias[0]).reshape(-1)
    assert out.shape == (N * H * W,)
    assert jnp.allclose(out, ref, atol=1e-4, rtol=1e-4)

    print("KERNEL_OK")
</pallas_src>

<mosaic_0001>
module attributes {stable_mosaic.version = 11 : i64} {
  func.func @hhead_kernel(%arg0: i32, %arg1: i32, %arg2: memref<2x1024x16xf32, #tpu.memory_space<vmem>>, %arg3: memref<1024x1xf32, #tpu.memory_space<vmem>>, %arg4: memref<1x1xf32, #tpu.memory_space<smem>>, %arg5: memref<2x16xf32, #tpu.memory_space<vmem>>, %arg6: memref<2x16xf32, #tpu.memory_space<vmem>>) attributes {dimension_semantics = [#tpu.dimension_semantics<parallel>, #tpu.dimension_semantics<arbitrary>], iteration_bounds = array<i64: 1, 1>, scalar_prefetch = 0 : i64, scratch_operands = 1 : i64, tpu.core_type = #tpu.core_type<tc>, window_params = [{transform_indices = @transform_0, window_bounds = array<i64: 2, 1024, 16>}, {transform_indices = @transform_1, window_bounds = array<i64: 1024, 1>}, {transform_indices = @transform_2, window_bounds = array<i64: 1, 1>}, {transform_indices = @transform_3, window_bounds = array<i64: 2, 16>}]} {
    %c0_i32 = arith.constant 0 : i32
    %0 = arith.cmpi eq, %arg1, %c0_i32 : i32
    %1 = arith.extui %0 : i1 to i32
    %c0_i32_0 = arith.constant 0 : i32
    %2 = arith.cmpi ne, %1, %c0_i32_0 : i32
    scf.if %2 {
      %cst_11 = arith.constant 0.000000e+00 : f32
      %15 = vector.broadcast %cst_11 : f32 to vector<2x16xf32>
      %c0_12 = arith.constant 0 : index
      %c0_13 = arith.constant 0 : index
      %16 = vector.load %arg6[%c0_12, %c0_13] : memref<2x16xf32, #tpu.memory_space<vmem>>, vector<2x16xf32>
      tpu.vector_store %arg6[%c0_12, %c0_13], %15 {strides = array<i32>} : memref<2x16xf32, #tpu.memory_space<vmem>>, vector<2x16xf32>,
    } else {
    }
    %c0 = arith.constant 0 : index
    %c0_1 = arith.constant 0 : index
    %c0_2 = arith.constant 0 : index
    %3 = vector.load %arg2[%c0, %c0_1, %c0_2] : memref<2x1024x16xf32, #tpu.memory_space<vmem>>, vector<2x1024x16xf32>
    %c0_3 = arith.constant 0 : index
    %c0_4 = arith.constant 0 : index
    %4 = vector.load %arg3[%c0_3, %c0_4] : memref<1024x1xf32, #tpu.memory_space<vmem>>, vector<1024x1xf32>
    %c0_5 = arith.constant 0 : index
    %c0_6 = arith.constant 0 : index
    %5 = vector.load %arg6[%c0_5, %c0_6] : memref<2x16xf32, #tpu.memory_space<vmem>>, vector<2x16xf32>
    %6 = vector.shape_cast %4 : vector<1024x1xf32> to vector<1x1024x1xf32>
    %7 = vector.broadcast %6 : vector<1x1024x1xf32> to vector<2x1024x16xf32>
    %8 = arith.mulf %3, %7 : vector<2x1024x16xf32>
    %cst = arith.constant dense<0.000000e+00> : vector<2x16xf32>
    %9 = vector.multi_reduction <add>, %8, %cst [1] : vector<2x1024x16xf32> to vector<2x16xf32>
    %10 = arith.addf %5, %9 : vector<2x16xf32>
    %c0_7 = arith.constant 0 : index
    %c0_8 = arith.constant 0 : index
    %11 = vector.load %arg6[%c0_7, %c0_8] : memref<2x16xf32, #tpu.memory_space<vmem>>, vector<2x16xf32>
    tpu.vector_store %arg6[%c0_7, %c0_8], %10 {strides = array<i32>} : memref<2x16xf32, #tpu.memory_space<vmem>>, vector<2x16xf32>,
    %c0_i32_9 = arith.constant 0 : i32
    %12 = arith.cmpi eq, %arg1, %c0_i32_9 : i32
    %13 = arith.extui %12 : i1 to i32
    %c0_i32_10 = arith.constant 0 : i32
    %14 = arith.cmpi ne, %13, %c0_i32_10 : i32
    scf.if %14 {
      %c0_11 = arith.constant 0 : index
      %c0_12 = arith.constant 0 : index
      %15 = vector.load %arg6[%c0_11, %c0_12] : memref<2x16xf32, #tpu.memory_space<vmem>>, vector<2x16xf32>
      %c0_13 = arith.constant 0 : index
      %c0_14 = arith.constant 0 : index
      %16 = memref.load %arg4[%c0_13, %c0_14] : memref<1x1xf32, #tpu.memory_space<smem>>
      %17 = vector.broadcast %16 : f32 to vector<2x16xf32>
      %18 = arith.addf %15, %17 : vector<2x16xf32>
      %c0_15 = arith.constant 0 : index
      %c0_16 = arith.constant 0 : index
      %19 = vector.load %arg5[%c0_15, %c0_16] : memref<2x16xf32, #tpu.memory_space<vmem>>, vector<2x16xf32>
      tpu.vector_store %arg5[%c0_15, %c0_16], %18 {strides = array<i32>} : memref<2x16xf32, #tpu.memory_space<vmem>>, vector<2x16xf32>,
    } else {
    }
    return
  }
  func.func @transform_0(%arg0: i32, %arg1: i32) -> (i32, i32, i32) {
    %c0_i32 = arith.constant 0 : i32
    %c0_i32_0 = arith.constant 0 : i32
    return %arg0, %arg1, %c0_i32 : i32, i32, i32
  }
  func.func @transform_1(%arg0: i32, %arg1: i32) -> (i32, i32) {
    %c0_i32 = arith.constant 0 : i32
    %c0_i32_0 = arith.constant 0 : i32
    return %arg1, %c0_i32 : i32, i32
  }
  func.func @transform_2(%arg0: i32, %arg1: i32) -> (i32, i32) {
    %c0_i32 = arith.constant 0 : i32
    %c0_i32_0 = arith.constant 0 : i32
    %c0_i32_1 = arith.constant 0 : i32
    return %c0_i32, %c0_i32_0 : i32, i32
  }
  func.func @transform_3(%arg0: i32, %arg1: i32) -> (i32, i32) {
    %c0_i32 = arith.constant 0 : i32
    %c0_i32_0 = arith.constant 0 : i32
    return %arg0, %c0_i32 : i32, i32
  }
}

</mosaic_0001>

<bundles_post_ra>
// kernel: tpu_custom_call.1
= control target key start
LH: loop header
LB: loop body
LE: loop exit
PB: predicated region body
PF: predicated region fallthrough
CT: control target
= control target key end

     0   :  { %v1883_v2 = vmov 0   ;;  %s3323_s0 = inlined_call_operand.vmem [shape: f32[2,1024,16], index: 0, kind: input, shape index: {}]   ;;  %s3324_s1 = inlined_call_operand.vmem [shape: f32[1024,1], index: 1, kind: input, shape index: {}]   ;;  %s3325_s2 = inlined_call_operand.<no memory space> [shape: f32[1,1], index: 2, kind: input, shape index: {}]   ;;  %s3326_s3 = inlined_call_operand.hbm [shape: f32[2,16], index: 3, kind: output, shape index: {}]  }
   0x1   :  { %v280_v0 = vld [vmem:[%s3324_s1 + $0x10] sm:$0xff]  ;;  %v278_v1 = vld [vmem:[%s3324_s1] sm:$0xff]  ;;  %1860 = vset.pattern.permute.xlu1 %v1883_v2  ;;  %1859 = vset.pattern.permute.xlu0 %v1883_v2  ;;  %v281_v3 = vld [vmem:[%s3324_s1 + $0x18] sm:$0xff] }
   0x2   :  { %419 = vperm.xlu1 %1860, %v280_v0   ;;  %409 = vperm.xlu0 %1859, %v278_v1   ;;  %v279_v4 = vld [vmem:[%s3324_s1 + $0x8] sm:$0xff]  ;;  %v282_v6 = vld [vmem:[%s3324_s1 + $0x20] sm:$0xff]  ;;  %v285_v7 = vld [vmem:[%s3324_s1 + $0x38] sm:$0xff] }
   0x3   :  { %v283_v5 = vld [vmem:[%s3324_s1 + $0x28] sm:$0xff]  ;;  %v284_v8 = vld [vmem:[%s3324_s1 + $0x30] sm:$0xff]  ;;  %v286_v10 = vld [vmem:[%s3324_s1 + $0x40] sm:$0xff] }
   0x4   :  { %v287_v9 = vld [vmem:[%s3324_s1 + $0x48] sm:$0xff]  ;;  %v289_v11 = vld [vmem:[%s3324_s1 + $0x58] sm:$0xff]  ;;  %v288_v12 = vld [vmem:[%s3324_s1 + $0x50] sm:$0xff] }
   0x5   :  { %v291_v13 = vld [vmem:[%s3324_s1 + $0x68] sm:$0xff]  ;;  %v290_v14 = vld [vmem:[%s3324_s1 + $0x60] sm:$0xff]  ;;  %v293_v15 = vld [vmem:[%s3324_s1 + $0x78] sm:$0xff] }
   0x6   :  { %424 = vperm.xlu1 %1860, %v281_v3   ;;  %414 = vperm.xlu0 %1859, %v279_v4   ;;  %v292_v16 = vld [vmem:[%s3324_s1 + $0x70] sm:$0xff]  ;;  %v295_v17 = vld [vmem:[%s3324_s1 + $0x88] sm:$0xff]  ;;  %v294_v18 = vld [vmem:[%s3324_s1 + $0x80] sm:$0xff] }
   0x7   :  { %v297_v19 = vld [vmem:[%s3324_s1 + $0x98] sm:$0xff]  ;;  %v296_v20 = vld [vmem:[%s3324_s1 + $0x90] sm:$0xff]  ;;  %v299_v21 = vld [vmem:[%s3324_s1 + $0xa8] sm:$0xff] }
   0x8   :  { %v298_v22 = vld [vmem:[%s3324_s1 + $0xa0] sm:$0xff]  ;;  %v301_v23 = vld [vmem:[%s3324_s1 + $0xb8] sm:$0xff]  ;;  %v300_v24 = vld [vmem:[%s3324_s1 + $0xb0] sm:$0xff] }
   0xa   :  { %434 = vperm.xlu1 %1860, %v283_v5   ;;  %429 = vperm.xlu0 %1859, %v282_v6  }
   0xe   :  { %444 = vperm.xlu1 %1860, %v285_v7   ;;  %439 = vperm.xlu0 %1859, %v284_v8  }
  0x12   :  { %454 = vperm.xlu1 %1860, %v287_v9   ;;  %449 = vperm.xlu0 %1859, %v286_v10  }
  0x16   :  { %464 = vperm.xlu1 %1860, %v289_v11   ;;  %459 = vperm.xlu0 %1859, %v288_v12  }
  0x1a   :  { %474 = vperm.xlu1 %1860, %v291_v13   ;;  %469 = vperm.xlu0 %1859, %v290_v14  }
  0x1e   :  { %484 = vperm.xlu1 %1860, %v293_v15   ;;  %479 = vperm.xlu0 %1859, %v292_v16  }
  0x22   :  { %494 = vperm.xlu1 %1860, %v295_v17   ;;  %489 = vperm.xlu0 %1859, %v294_v18  }
  0x26   :  { %504 = vperm.xlu1 %1860, %v297_v19   ;;  %499 = vperm.xlu0 %1859, %v296_v20  }
  0x2a   :  { %514 = vperm.xlu1 %1860, %v299_v21   ;;  %509 = vperm.xlu0 %1859, %v298_v22  }
  0x2b   :  { %9 = vsyncpa [#allocation5], 0  ;;  %v303_v25 = vld [vmem:[%s3324_s1 + $0xc8] sm:$0xff]  ;;  %v302_v26 = vld [vmem:[%s3324_s1 + $0xc0] sm:$0xff]  ;;  %vm1303_vm0 = vcmask 130048   ;;  %vm20_vm1 = vcmask 123904  }
  0x2c   :  { %v305_v27 = vld [vmem:[%s3324_s1 + $0xd8] sm:$0xff]  ;;  %v304_v28 = vld [vmem:[%s3324_s1 + $0xd0] sm:$0xff]  ;;  %v307_v29 = vld [vmem:[%s3324_s1 + $0xe8] sm:$0xff]  ;;  %vm1828_vm2 = vcmask 1041409   ;;  %s1885_s16 = smov [#allocation4]  }
  0x2d   :  { %v306_v30 = vld [vmem:[%s3324_s1 + $0xe0] sm:$0xff]  ;;  %v309_v31 = vld [vmem:[%s3324_s1 + $0xf8] sm:$0xff]  ;;  %v308_v32 = vld [vmem:[%s3324_s1 + $0xf0] sm:$0xff]  ;;  %s1848_s17 = sshll.u32 %s1885_s16, 4  ;;  %s1849_s17 = int_to_ptr.vmem [resolvable:$true] %s1848_s17 }
  0x2e   :  { %524 = vperm.xlu1 %1860, %v301_v23   ;;  %519 = vperm.xlu0 %1859, %v300_v24   ;;  %v311_v33 = vld [vmem:[%s3324_s1 + $0x108] sm:$0xff]  ;;  %v310_v34 = vld [vmem:[%s3324_s1 + $0x100] sm:$0xff]  ;;  %v313_v35 = vld [vmem:[%s3324_s1 + $0x118] sm:$0xff]  ;;  %s1861_s18 = scalar_lea.vmem %s1849_s17, 32  ;;  %p1866_p1 = scmp.lt.s32.totalorder %s1849_s17, %s1849_s17 }
  0x2f   :  { %v312_v36 = vld [vmem:[%s3324_s1 + $0x110] sm:$0xff]  ;;  %v315_v37 = vld [vmem:[%s3324_s1 + $0x128] sm:$0xff]  ;;  %v314_v38 = vld [vmem:[%s3324_s1 + $0x120] sm:$0xff]  ;;  %p1862_p0 = scmp.ne.s32.totalorder %s1849_s17, %s1861_s18  ;;  %p1867_p2 = scmp.lt.s32.totalorder %s1861_s18, %s1861_s18 }
  0x30   :  { %v317_v39 = vld [vmem:[%s3324_s1 + $0x138] sm:$0xff]  ;;  %v316_v40 = vld [vmem:[%s3324_s1 + $0x130] sm:$0xff]  ;;  %v319_v41 = vld [vmem:[%s3324_s1 + $0x148] sm:$0xff] }
  0x31   :  { %v318_v42 = vld [vmem:[%s3324_s1 + $0x140] sm:$0xff]  ;;  %v321_v43 = vld [vmem:[%s3324_s1 + $0x158] sm:$0xff]  ;;  %v320_v44 = vld [vmem:[%s3324_s1 + $0x150] sm:$0xff]  ;;  %p1868_p3 = por %p1867_p2, %p1866_p1 }
  0x32   :  { %534 = vperm.xlu1 %1860, %v303_v25   ;;  %529 = vperm.xlu0 %1859, %v302_v26   ;;  %v323_v45 = vld [vmem:[%s3324_s1 + $0x168] sm:$0xff]  ;;  %v322_v46 = vld [vmem:[%s3324_s1 + $0x160] sm:$0xff]  ;;  %v325_v47 = vld [vmem:[%s3324_s1 + $0x178] sm:$0xff] }
  0x33   :  { %v324_v48 = vld [vmem:[%s3324_s1 + $0x170] sm:$0xff]  ;;  %v327_v49 = vld [vmem:[%s3324_s1 + $0x188] sm:$0xff]  ;;  %v326_v50 = vld [vmem:[%s3324_s1 + $0x180] sm:$0xff]  ;;  %p1869_p4 = pnand %p1868_p3, %p1862_p0 }
  0x34   :  { %v329_v51 = vld [vmem:[%s3324_s1 + $0x198] sm:$0xff]  ;;  %v328_v52 = vld [vmem:[%s3324_s1 + $0x190] sm:$0xff]  ;;  %v331_v53 = vld [vmem:[%s3324_s1 + $0x1a8] sm:$0xff] }
  0x35   :  { %v330_v54 = vld [vmem:[%s3324_s1 + $0x1a0] sm:$0xff]  ;;  %v333_v55 = vld [vmem:[%s3324_s1 + $0x1b8] sm:$0xff]  ;;  %v332_v56 = vld [vmem:[%s3324_s1 + $0x1b0] sm:$0xff] }
  0x36   :  { %544 = vperm.xlu1 %1860, %v305_v27   ;;  %539 = vperm.xlu0 %1859, %v304_v28   ;;  %v335_v57 = vld [vmem:[%s3324_s1 + $0x1c8] sm:$0xff]  ;;  %v334_v58 = vld [vmem:[%s3324_s1 + $0x1c0] sm:$0xff]  ;;  %v337_v59 = vld [vmem:[%s3324_s1 + $0x1d8] sm:$0xff] }
  0x37   :  { %v336_v60 = vld [vmem:[%s3324_s1 + $0x1d0] sm:$0xff]  ;;  %v339_v61 = vld [vmem:[%s3324_s1 + $0x1e8] sm:$0xff]  ;;  %v338_v62 = vld [vmem:[%s3324_s1 + $0x1e0] sm:$0xff] }
  0x38   :  { %v341_v63 = vld [vmem:[%s3324_s1 + $0x1f8] sm:$0xff]  ;;  %v22_v0 = vld [vmem:[%s3323_s0] sm:$0xff]  ;;  %v340_v2 = vld [vmem:[%s3324_s1 + $0x1f0] sm:$0xff] }
  0x39   :  { %v150_v1 = vld [vmem:[%s3323_s0 + $0x400] sm:$0xff]  ;;  %v24_v5 = vld [vmem:[%s3323_s0 + $0x10] sm:$0xff]  ;;  %v23_v9 = vld [vmem:[%s3323_s0 + $0x8] sm:$0xff] }
  0x3a   :  { %554 = vperm.xlu1 %1860, %v307_v29   ;;  %549 = vperm.xlu0 %1859, %v306_v30   ;;  %v152_v6 = vld [vmem:[%s3323_s0 + $0x410] sm:$0xff]  ;;  %v151_v10 = vld [vmem:[%s3323_s0 + $0x408] sm:$0xff]  ;;  %v342_v12 = vld [vmem:[%s3324_s1 + $0x200] sm:$0xff] }
  0x3b   :  { %v343_v11 = vld [vmem:[%s3324_s1 + $0x208] sm:$0xff]  ;;  %v25_v14 = vld [vmem:[%s3323_s0 + $0x18] sm:$0xff]  ;;  %v26_v23 = vld [vmem:[%s3323_s0 + $0x20] sm:$0xff] }
  0x3c   :  { %v153_v15 = vld [vmem:[%s3323_s0 + $0x418] sm:$0xff]  ;;  %v154_v24 = vld [vmem:[%s3323_s0 + $0x420] sm:$0xff]  ;;  %v344_v30 = vld [vmem:[%s3324_s1 + $0x210] sm:$0xff] }
  0x3d   :  { %v345_v25 = vld [vmem:[%s3324_s1 + $0x218] sm:$0xff] }
  0x3e   :  { %564 = vperm.xlu1 %1860, %v309_v31   ;;  %559 = vperm.xlu0 %1859, %v308_v32  }
  0x42   :  { %574 = vperm.xlu1 %1860, %v311_v33   ;;  %569 = vperm.xlu0 %1859, %v310_v34   ;;  %v27_v34 = vld [vmem:[%s3323_s0 + $0x28] sm:$0xff] }
  0x46   :  { %584 = vperm.xlu1 %1860, %v313_v35   ;;  %579 = vperm.xlu0 %1859, %v312_v36   ;;  %v155_v35 = vld [vmem:[%s3323_s0 + $0x428] sm:$0xff] }
  0x4a   :  { %594 = vperm.xlu1 %1860, %v315_v37   ;;  %589 = vperm.xlu0 %1859, %v314_v38  }
  0x4e   :  { %604 = vperm.xlu1 %1860, %v317_v39   ;;  %599 = vperm.xlu0 %1859, %v316_v40  }
  0x52   :  { %614 = vperm.xlu1 %1860, %v319_v41   ;;  %609 = vperm.xlu0 %1859, %v318_v42  }
  0x56   :  { %624 = vperm.xlu1 %1860, %v321_v43   ;;  %619 = vperm.xlu0 %1859, %v320_v44   ;;  %v28_v43 = vld [vmem:[%s3323_s0 + $0x30] sm:$0xff] }
  0x57   :  { %v156_v44 = vld [vmem:[%s3323_s0 + $0x430] sm:$0xff] }
  0x5a   :  { %634 = vperm.xlu1 %1860, %v323_v45   ;;  %629 = vperm.xlu0 %1859, %v322_v46   ;;  %v347_v45 = vld [vmem:[%s3324_s1 + $0x228] sm:$0xff] }
  0x5e   :  { %644 = vperm.xlu1 %1860, %v325_v47   ;;  %639 = vperm.xlu0 %1859, %v324_v48  }
  0x62   :  { %654 = vperm.xlu1 %1860, %v327_v49   ;;  %649 = vperm.xlu0 %1859, %v326_v50   ;;  %v346_v50 = vld [vmem:[%s3324_s1 + $0x220] sm:$0xff] }
  0x66   :  { %664 = vperm.xlu1 %1860, %v329_v51   ;;  %659 = vperm.xlu0 %1859, %v328_v52  }
  0x6a   :  { %674 = vperm.xlu1 %1860, %v331_v53   ;;  %669 = vperm.xlu0 %1859, %v330_v54   ;;  %v29_v54 = vld [vmem:[%s3323_s0 + $0x38] sm:$0xff] }
  0x6e   :  { %684 = vperm.xlu1 %1860, %v333_v55   ;;  %679 = vperm.xlu0 %1859, %v332_v56   ;;  %v157_v55 = vld [vmem:[%s3323_s0 + $0x438] sm:$0xff] }
  0x72   :  { %694 = vperm.xlu1 %1860, %v335_v57   ;;  %689 = vperm.xlu0 %1859, %v334_v58  }
  0x76   :  { %704 = vperm.xlu1 %1860, %v337_v59   ;;  %699 = vperm.xlu0 %1859, %v336_v60  }
  0x7a   :  { %714 = vperm.xlu1 %1860, %v339_v61   ;;  %709 = vperm.xlu0 %1859, %v338_v62  }
  0x7d   :  { %v420_v3 = vpop.permute.xlu1 %419  ;;  %v410_v4 = vpop.permute.xlu0 %409 }
  0x7e   :  { %724 = vperm.xlu1 %1860, %v341_v63   ;;  %v1047_v7 = vmul.f32 %v410_v4, %v22_v0  ;;  %v1175_v8 = vmul.f32 %v410_v4, %v150_v1  ;;  %719 = vperm.xlu0 %1859, %v340_v2   ;;  %v1049_v17 = vmul.f32 %v420_v3, %v24_v5  ;;  %v30_v63 = vld [vmem:[%s3323_s0 + $0x40] sm:$0xff]  ;;  %v349_v1 = vld [vmem:[%s3324_s1 + $0x238] sm:$0xff] }
  0x7f   :  { %v1177_v18 = vmul.f32 %v420_v3, %v152_v6  ;;  %v158_v0 = vld [vmem:[%s3323_s0 + $0x440] sm:$0xff]  ;;  %v348_v6 = vld [vmem:[%s3324_s1 + $0x230] sm:$0xff] }
  0x80   :  { %v1304_v21 = vsel %vm1303_vm0, %v1047_v7, 0.0  ;;  %v1565_v22 = vsel %vm1303_vm0, %v1175_v8, 0.0  ;;  %v1307_v37 = vsel %vm1303_vm0, %v1049_v17, 0.0 }
  0x81   :  { %v425_v13 = vpop.permute.xlu1 %424  ;;  %v415_v16 = vpop.permute.xlu0 %414  ;;  %v1568_v38 = vsel %vm1303_vm0, %v1177_v18, 0.0 }
  0x82   :  { %v1048_v19 = vmul.f32 %v415_v16, %v23_v9  ;;  %v1176_v20 = vmul.f32 %v415_v16, %v151_v10  ;;  %734 = vperm.xlu1 %1860, %v343_v11   ;;  %729 = vperm.xlu0 %1859, %v342_v12   ;;  %v1050_v26 = vmul.f32 %v425_v13, %v25_v14  ;;  %v31_v10 = vld [vmem:[%s3323_s0 + $0x48] sm:$0xff] }
  0x83   :  { %v1178_v27 = vmul.f32 %v425_v13, %v153_v15  ;;  %v159_v11 = vld [vmem:[%s3323_s0 + $0x448] sm:$0xff] }
  0x84   :  { %v1305_v28 = vsel %vm1303_vm0, %v1048_v19, 0.0  ;;  %v1566_v29 = vsel %vm1303_vm0, %v1176_v20, 0.0  ;;  %v1309_v46 = vsel %vm1303_vm0, %v1050_v26, 0.0  ;;  %v32_v19 = vld [vmem:[%s3323_s0 + $0x50] sm:$0xff]  ;;  %v350_v26 = vld [vmem:[%s3324_s1 + $0x240] sm:$0xff] }
  0x85   :  { %v1306_v31 = vadd.f32 %v1305_v28, %v1304_v21  ;;  %v1567_v32 = vadd.f32 %v1566_v29, %v1565_v22  ;;  %v435_v33 = vpop.permute.xlu1 %434  ;;  %v430_v36 = vpop.permute.xlu0 %429  ;;  %v1570_v47 = vsel %vm1303_vm0, %v1178_v27, 0.0  ;;  %v160_v20 = vld [vmem:[%s3323_s0 + $0x450] sm:$0xff]  ;;  %v351_v21 = vld [vmem:[%s3324_s1 + $0x248] sm:$0xff] }
  0x86   :  { %v1051_v39 = vmul.f32 %v430_v36, %v26_v23  ;;  %v1179_v40 = vmul.f32 %v430_v36, %v154_v24  ;;  %744 = vperm.xlu1 %1860, %v345_v25   ;;  %739 = vperm.xlu0 %1859, %v344_v30   ;;  %v1052_v48 = vmul.f32 %v435_v33, %v27_v34  ;;  %v33_v30 = vld [vmem:[%s3323_s0 + $0x58] sm:$0xff] }
  0x87   :  { %v1308_v41 = vadd.f32 %v1307_v37, %v1306_v31  ;;  %v1569_v42 = vadd.f32 %v1568_v38, %v1567_v32  ;;  %v1180_v49 = vmul.f32 %v435_v33, %v155_v35  ;;  %v161_v31 = vld [vmem:[%s3323_s0 + $0x458] sm:$0xff] }
  0x88   :  { %v1311_v57 = vsel %vm1303_vm0, %v1051_v39, 0.0  ;;  %v1572_v58 = vsel %vm1303_vm0, %v1179_v40, 0.0  ;;  %v1313_v2 = vsel %vm1303_vm0, %v1052_v48, 0.0  ;;  %v34_v39 = vld [vmem:[%s3323_s0 + $0x60] sm:$0xff] }
  0x89   :  { %v1310_v51 = vadd.f32 %v1309_v46, %v1308_v41  ;;  %v1571_v52 = vadd.f32 %v1570_v47, %v1569_v42  ;;  %v445_v53 = vpop.permute.xlu1 %444  ;;  %v440_v56 = vpop.permute.xlu0 %439  ;;  %v1574_v3 = vsel %vm1303_vm0, %v1180_v49, 0.0  ;;  %v162_v40 = vld [vmem:[%s3323_s0 + $0x460] sm:$0xff]  ;;  %v353_v41 = vld [vmem:[%s3324_s1 + $0x258] sm:$0xff]  ;;  %v352_v46 = vld [vmem:[%s3324_s1 + $0x250] sm:$0xff] }
  0x8a   :  { %v1053_v59 = vmul.f32 %v440_v56, %v28_v43  ;;  %v1181_v60 = vmul.f32 %v440_v56, %v156_v44  ;;  %754 = vperm.xlu1 %1860, %v347_v45   ;;  %749 = vperm.xlu0 %1859, %v346_v50   ;;  %v1054_v4 = vmul.f32 %v445_v53, %v29_v54  ;;  %v35_v50 = vld [vmem:[%s3323_s0 + $0x68] sm:$0xff] }
  0x8b   :  { %v1312_v61 = vadd.f32 %v1311_v57, %v1310_v51  ;;  %v1573_v62 = vadd.f32 %v1572_v58, %v1571_v52  ;;  %v1182_v5 = vmul.f32 %v445_v53, %v157_v55  ;;  %v163_v51 = vld [vmem:[%s3323_s0 + $0x468] sm:$0xff] }
  0x8c   :  { %v1315_v13 = vsel %vm1303_vm0, %v1053_v59, 0.0  ;;  %v1576_v14 = vsel %vm1303_vm0, %v1181_v60, 0.0  ;;  %v1317_v22 = vsel %vm1303_vm0, %v1054_v4, 0.0  ;;  %v36_v59 = vld [vmem:[%s3323_s0 + $0x70] sm:$0xff] }
  0x8d   :  { %v1314_v7 = vadd.f32 %v1313_v2, %v1312_v61  ;;  %v1575_v8 = vadd.f32 %v1574_v3, %v1573_v62  ;;  %v455_v9 = vpop.permute.xlu1 %454  ;;  %v450_v12 = vpop.permute.xlu0 %449  ;;  %v1578_v23 = vsel %vm1303_vm0, %v1182_v5, 0.0  ;;  %v164_v60 = vld [vmem:[%s3323_s0 + $0x470] sm:$0xff]  ;;  %v355_v61 = vld [vmem:[%s3324_s1 + $0x268] sm:$0xff]  ;;  %v354_v2 = vld [vmem:[%s3324_s1 + $0x260] sm:$0xff] }
  0x8e   :  { %v1055_v15 = vmul.f32 %v450_v12, %v30_v63  ;;  %v1183_v16 = vmul.f32 %v450_v12, %v158_v0  ;;  %764 = vperm.xlu1 %1860, %v349_v1   ;;  %759 = vperm.xlu0 %1859, %v348_v6   ;;  %v1056_v24 = vmul.f32 %v455_v9, %v31_v10  ;;  %v37_v6 = vld [vmem:[%s3323_s0 + $0x78] sm:$0xff] }
  0x8f   :  { %v1316_v17 = vadd.f32 %v1315_v13, %v1314_v7  ;;  %v1577_v18 = vadd.f32 %v1576_v14, %v1575_v8  ;;  %v1184_v25 = vmul.f32 %v455_v9, %v159_v11  ;;  %v165_v7 = vld [vmem:[%s3323_s0 + $0x478] sm:$0xff] }
  0x90   :  { %v1319_v33 = vsel %vm1303_vm0, %v1055_v15, 0.0  ;;  %v1580_v34 = vsel %vm1303_vm0, %v1183_v16, 0.0  ;;  %v1321_v42 = vsel %vm1303_vm0, %v1056_v24, 0.0  ;;  %v38_v15 = vld [vmem:[%s3323_s0 + $0x80] sm:$0xff] }
  0x91   :  { %v1318_v27 = vadd.f32 %v1317_v22, %v1316_v17  ;;  %v1579_v28 = vadd.f32 %v1578_v23, %v1577_v18  ;;  %v465_v29 = vpop.permute.xlu1 %464  ;;  %v460_v32 = vpop.permute.xlu0 %459  ;;  %v1582_v43 = vsel %vm1303_vm0, %v1184_v25, 0.0  ;;  %v166_v16 = vld [vmem:[%s3323_s0 + $0x480] sm:$0xff]  ;;  %v357_v17 = vld [vmem:[%s3324_s1 + $0x278] sm:$0xff]  ;;  %v356_v22 = vld [vmem:[%s3324_s1 + $0x270] sm:$0xff] }
  0x92   :  { %v1057_v35 = vmul.f32 %v460_v32, %v32_v19  ;;  %v1185_v36 = vmul.f32 %v460_v32, %v160_v20  ;;  %774 = vperm.xlu1 %1860, %v351_v21   ;;  %769 = vperm.xlu0 %1859, %v350_v26   ;;  %v1058_v44 = vmul.f32 %v465_v29, %v33_v30  ;;  %v39_v26 = vld [vmem:[%s3323_s0 + $0x88] sm:$0xff] }
  0x93   :  { %v1320_v37 = vadd.f32 %v1319_v33, %v1318_v27  ;;  %v1581_v38 = vadd.f32 %v1580_v34, %v1579_v28  ;;  %v1186_v45 = vmul.f32 %v465_v29, %v161_v31  ;;  %v167_v27 = vld [vmem:[%s3323_s0 + $0x488] sm:$0xff] }
  0x94   :  { %v1323_v53 = vsel %vm1303_vm0, %v1057_v35, 0.0  ;;  %v1584_v54 = vsel %vm1303_vm0, %v1185_v36, 0.0  ;;  %v1325_v62 = vsel %vm1303_vm0, %v1058_v44, 0.0  ;;  %v40_v35 = vld [vmem:[%s3323_s0 + $0x90] sm:$0xff] }
  0x95   :  { %v1322_v47 = vadd.f32 %v1321_v42, %v1320_v37  ;;  %v1583_v48 = vadd.f32 %v1582_v43, %v1581_v38  ;;  %v475_v49 = vpop.permute.xlu1 %474  ;;  %v470_v52 = vpop.permute.xlu0 %469  ;;  %v1586_v63 = vsel %vm1303_vm0, %v1186_v45, 0.0  ;;  %v168_v36 = vld [vmem:[%s3323_s0 + $0x490] sm:$0xff]  ;;  %v359_v37 = vld [vmem:[%s3324_s1 + $0x288] sm:$0xff]  ;;  %v358_v42 = vld [vmem:[%s3324_s1 + $0x280] sm:$0xff] }
  0x96   :  { %v1059_v55 = vmul.f32 %v470_v52, %v34_v39  ;;  %v1187_v56 = vmul.f32 %v470_v52, %v162_v40  ;;  %784 = vperm.xlu1 %1860, %v353_v41   ;;  %779 = vperm.xlu0 %1859, %v352_v46   ;;  %v1060_v0 = vmul.f32 %v475_v49, %v35_v50  ;;  %v41_v46 = vld [vmem:[%s3323_s0 + $0x98] sm:$0xff] }
  0x97   :  { %v1324_v57 = vadd.f32 %v1323_v53, %v1322_v47  ;;  %v1585_v58 = vadd.f32 %v1584_v54, %v1583_v48  ;;  %v1188_v1 = vmul.f32 %v475_v49, %v163_v51  ;;  %v169_v47 = vld [vmem:[%s3323_s0 + $0x498] sm:$0xff] }
  0x98   :  { %v1327_v9 = vsel %vm1303_vm0, %v1059_v55, 0.0  ;;  %v1588_v10 = vsel %vm1303_vm0, %v1187_v56, 0.0  ;;  %v1329_v18 = vsel %vm1303_vm0, %v1060_v0, 0.0  ;;  %v42_v55 = vld [vmem:[%s3323_s0 + $0xa0] sm:$0xff] }
  0x99   :  { %v1326_v3 = vadd.f32 %v1325_v62, %v1324_v57  ;;  %v1587_v4 = vadd.f32 %v1586_v63, %v1585_v58  ;;  %v485_v5 = vpop.permute.xlu1 %484  ;;  %v480_v8 = vpop.permute.xlu0 %479  ;;  %v1590_v19 = vsel %vm1303_vm0, %v1188_v1, 0.0  ;;  %v170_v56 = vld [vmem:[%s3323_s0 + $0x4a0] sm:$0xff]  ;;  %v361_v57 = vld [vmem:[%s3324_s1 + $0x298] sm:$0xff]  ;;  %v360_v62 = vld [vmem:[%s3324_s1 + $0x290] sm:$0xff] }
  0x9a   :  { %v1061_v11 = vmul.f32 %v480_v8, %v36_v59  ;;  %v1189_v12 = vmul.f32 %v480_v8, %v164_v60  ;;  %794 = vperm.xlu1 %1860, %v355_v61   ;;  %789 = vperm.xlu0 %1859, %v354_v2   ;;  %v1062_v20 = vmul.f32 %v485_v5, %v37_v6  ;;  %v43_v2 = vld [vmem:[%s3323_s0 + $0xa8] sm:$0xff] }
  0x9b   :  { %v1328_v13 = vadd.f32 %v1327_v9, %v1326_v3  ;;  %v1589_v14 = vadd.f32 %v1588_v10, %v1587_v4  ;;  %v1190_v21 = vmul.f32 %v485_v5, %v165_v7  ;;  %v171_v3 = vld [vmem:[%s3323_s0 + $0x4a8] sm:$0xff] }
  0x9c   :  { %v1331_v29 = vsel %vm1303_vm0, %v1061_v11, 0.0  ;;  %v1592_v30 = vsel %vm1303_vm0, %v1189_v12, 0.0  ;;  %v1333_v38 = vsel %vm1303_vm0, %v1062_v20, 0.0  ;;  %v44_v11 = vld [vmem:[%s3323_s0 + $0xb0] sm:$0xff] }
  0x9d   :  { %v1330_v23 = vadd.f32 %v1329_v18, %v1328_v13  ;;  %v1591_v24 = vadd.f32 %v1590_v19, %v1589_v14  ;;  %v495_v25 = vpop.permute.xlu1 %494  ;;  %v490_v28 = vpop.permute.xlu0 %489  ;;  %v1594_v39 = vsel %vm1303_vm0, %v1190_v21, 0.0  ;;  %v172_v12 = vld [vmem:[%s3323_s0 + $0x4b0] sm:$0xff]  ;;  %v363_v13 = vld [vmem:[%s3324_s1 + $0x2a8] sm:$0xff]  ;;  %v362_v18 = vld [vmem:[%s3324_s1 + $0x2a0] sm:$0xff] }
  0x9e   :  { %v1063_v31 = vmul.f32 %v490_v28, %v38_v15  ;;  %v1191_v32 = vmul.f32 %v490_v28, %v166_v16  ;;  %804 = vperm.xlu1 %1860, %v357_v17   ;;  %799 = vperm.xlu0 %1859, %v356_v22   ;;  %v1064_v40 = vmul.f32 %v495_v25, %v39_v26  ;;  %v45_v22 = vld [vmem:[%s3323_s0 + $0xb8] sm:$0xff] }
  0x9f   :  { %v1332_v33 = vadd.f32 %v1331_v29, %v1330_v23  ;;  %v1593_v34 = vadd.f32 %v1592_v30, %v1591_v24  ;;  %v1192_v41 = vmul.f32 %v495_v25, %v167_v27  ;;  %v173_v23 = vld [vmem:[%s3323_s0 + $0x4b8] sm:$0xff] }
  0xa0   :  { %v1335_v49 = vsel %vm1303_vm0, %v1063_v31, 0.0  ;;  %v1596_v50 = vsel %vm1303_vm0, %v1191_v32, 0.0  ;;  %v1337_v58 = vsel %vm1303_vm0, %v1064_v40, 0.0  ;;  %v46_v31 = vld [vmem:[%s3323_s0 + $0xc0] sm:$0xff] }
  0xa1   :  { %v1334_v43 = vadd.f32 %v1333_v38, %v1332_v33  ;;  %v1595_v44 = vadd.f32 %v1594_v39, %v1593_v34  ;;  %v505_v45 = vpop.permute.xlu1 %504  ;;  %v500_v48 = vpop.permute.xlu0 %499  ;;  %v1598_v59 = vsel %vm1303_vm0, %v1192_v41, 0.0  ;;  %v174_v32 = vld [vmem:[%s3323_s0 + $0x4c0] sm:$0xff]  ;;  %v365_v33 = vld [vmem:[%s3324_s1 + $0x2b8] sm:$0xff]  ;;  %v364_v38 = vld [vmem:[%s3324_s1 + $0x2b0] sm:$0xff] }
  0xa2   :  { %v1065_v51 = vmul.f32 %v500_v48, %v40_v35  ;;  %v1193_v52 = vmul.f32 %v500_v48, %v168_v36  ;;  %814 = vperm.xlu1 %1860, %v359_v37   ;;  %809 = vperm.xlu0 %1859, %v358_v42   ;;  %v1066_v60 = vmul.f32 %v505_v45, %v41_v46  ;;  %v47_v42 = vld [vmem:[%s3323_s0 + $0xc8] sm:$0xff] }
  0xa3   :  { %v1336_v53 = vadd.f32 %v1335_v49, %v1334_v43  ;;  %v1597_v54 = vadd.f32 %v1596_v50, %v1595_v44  ;;  %v1194_v61 = vmul.f32 %v505_v45, %v169_v47  ;;  %v175_v43 = vld [vmem:[%s3323_s0 + $0x4c8] sm:$0xff] }
  0xa4   :  { %v1339_v5 = vsel %vm1303_vm0, %v1065_v51, 0.0  ;;  %v1600_v6 = vsel %vm1303_vm0, %v1193_v52, 0.0  ;;  %v1341_v14 = vsel %vm1303_vm0, %v1066_v60, 0.0  ;;  %v48_v51 = vld [vmem:[%s3323_s0 + $0xd0] sm:$0xff] }
  0xa5   :  { %v1338_v63 = vadd.f32 %v1337_v58, %v1336_v53  ;;  %v1599_v0 = vadd.f32 %v1598_v59, %v1597_v54  ;;  %v515_v1 = vpop.permute.xlu1 %514  ;;  %v510_v4 = vpop.permute.xlu0 %509  ;;  %v1602_v15 = vsel %vm1303_vm0, %v1194_v61, 0.0  ;;  %v176_v52 = vld [vmem:[%s3323_s0 + $0x4d0] sm:$0xff]  ;;  %v367_v53 = vld [vmem:[%s3324_s1 + $0x2c8] sm:$0xff]  ;;  %v366_v58 = vld [vmem:[%s3324_s1 + $0x2c0] sm:$0xff] }
  0xa6   :  { %v1067_v7 = vmul.f32 %v510_v4, %v42_v55  ;;  %v1195_v8 = vmul.f32 %v510_v4, %v170_v56  ;;  %824 = vperm.xlu1 %1860, %v361_v57   ;;  %819 = vperm.xlu0 %1859, %v360_v62   ;;  %v1068_v16 = vmul.f32 %v515_v1, %v43_v2  ;;  %v49_v62 = vld [vmem:[%s3323_s0 + $0xd8] sm:$0xff] }
  0xa7   :  { %v1340_v9 = vadd.f32 %v1339_v5, %v1338_v63  ;;  %v1601_v10 = vadd.f32 %v1600_v6, %v1599_v0  ;;  %v1196_v17 = vmul.f32 %v515_v1, %v171_v3  ;;  %v177_v63 = vld [vmem:[%s3323_s0 + $0x4d8] sm:$0xff] }
  0xa8   :  { %v1343_v25 = vsel %vm1303_vm0, %v1067_v7, 0.0  ;;  %v1604_v26 = vsel %vm1303_vm0, %v1195_v8, 0.0  ;;  %v1345_v34 = vsel %vm1303_vm0, %v1068_v16, 0.0  ;;  %v50_v7 = vld [vmem:[%s3323_s0 + $0xe0] sm:$0xff] }
  0xa9   :  { %v1342_v19 = vadd.f32 %v1341_v14, %v1340_v9  ;;  %v1603_v20 = vadd.f32 %v1602_v15, %v1601_v10  ;;  %v525_v21 = vpop.permute.xlu1 %524  ;;  %v520_v24 = vpop.permute.xlu0 %519  ;;  %v1606_v35 = vsel %vm1303_vm0, %v1196_v17, 0.0  ;;  %v178_v8 = vld [vmem:[%s3323_s0 + $0x4e0] sm:$0xff]  ;;  %v369_v9 = vld [vmem:[%s3324_s1 + $0x2d8] sm:$0xff]  ;;  %v368_v14 = vld [vmem:[%s3324_s1 + $0x2d0] sm:$0xff] }
  0xaa   :  { %v1069_v27 = vmul.f32 %v520_v24, %v44_v11  ;;  %v1197_v28 = vmul.f32 %v520_v24, %v172_v12  ;;  %834 = vperm.xlu1 %1860, %v363_v13   ;;  %829 = vperm.xlu0 %1859, %v362_v18   ;;  %v1070_v36 = vmul.f32 %v525_v21, %v45_v22  ;;  %v51_v18 = vld [vmem:[%s3323_s0 + $0xe8] sm:$0xff] }
  0xab   :  { %v1344_v29 = vadd.f32 %v1343_v25, %v1342_v19  ;;  %v1605_v30 = vadd.f32 %v1604_v26, %v1603_v20  ;;  %v1198_v37 = vmul.f32 %v525_v21, %v173_v23  ;;  %v179_v19 = vld [vmem:[%s3323_s0 + $0x4e8] sm:$0xff] }
  0xac   :  { %v1347_v45 = vsel %vm1303_vm0, %v1069_v27, 0.0  ;;  %v1608_v46 = vsel %vm1303_vm0, %v1197_v28, 0.0  ;;  %v1349_v54 = vsel %vm1303_vm0, %v1070_v36, 0.0  ;;  %v52_v27 = vld [vmem:[%s3323_s0 + $0xf0] sm:$0xff] }
  0xad   :  { %v1346_v39 = vadd.f32 %v1345_v34, %v1344_v29  ;;  %v1607_v40 = vadd.f32 %v1606_v35, %v1605_v30  ;;  %v535_v41 = vpop.permute.xlu1 %534  ;;  %v530_v44 = vpop.permute.xlu0 %529  ;;  %v1610_v55 = vsel %vm1303_vm0, %v1198_v37, 0.0  ;;  %v180_v28 = vld [vmem:[%s3323_s0 + $0x4f0] sm:$0xff]  ;;  %v371_v29 = vld [vmem:[%s3324_s1 + $0x2e8] sm:$0xff]  ;;  %v370_v34 = vld [vmem:[%s3324_s1 + $0x2e0] sm:$0xff] }
  0xae   :  { %v1071_v47 = vmul.f32 %v530_v44, %v46_v31  ;;  %v1199_v48 = vmul.f32 %v530_v44, %v174_v32  ;;  %844 = vperm.xlu1 %1860, %v365_v33   ;;  %839 = vperm.xlu0 %1859, %v364_v38   ;;  %v1072_v56 = vmul.f32 %v535_v41, %v47_v42  ;;  %v53_v38 = vld [vmem:[%s3323_s0 + $0xf8] sm:$0xff] }
  0xaf   :  { %v1348_v49 = vadd.f32 %v1347_v45, %v1346_v39  ;;  %v1609_v50 = vadd.f32 %v1608_v46, %v1607_v40  ;;  %v1200_v57 = vmul.f32 %v535_v41, %v175_v43  ;;  %v181_v39 = vld [vmem:[%s3323_s0 + $0x4f8] sm:$0xff] }
  0xb0   :  { %v1351_v1 = vsel %vm1303_vm0, %v1071_v47, 0.0  ;;  %v1612_v2 = vsel %vm1303_vm0, %v1199_v48, 0.0  ;;  %v1353_v10 = vsel %vm1303_vm0, %v1072_v56, 0.0  ;;  %v54_v47 = vld [vmem:[%s3323_s0 + $0x100] sm:$0xff] }
  0xb1   :  { %v1350_v59 = vadd.f32 %v1349_v54, %v1348_v49  ;;  %v1611_v60 = vadd.f32 %v1610_v55, %v1609_v50  ;;  %v545_v61 = vpop.permute.xlu1 %544  ;;  %v540_v0 = vpop.permute.xlu0 %539  ;;  %v1614_v11 = vsel %vm1303_vm0, %v1200_v57, 0.0  ;;  %v182_v48 = vld [vmem:[%s3323_s0 + $0x500] sm:$0xff]  ;;  %v373_v49 = vld [vmem:[%s3324_s1 + $0x2f8] sm:$0xff]  ;;  %v372_v54 = vld [vmem:[%s3324_s1 + $0x2f0] sm:$0xff] }
  0xb2   :  { %v1073_v3 = vmul.f32 %v540_v0, %v48_v51  ;;  %v1201_v4 = vmul.f32 %v540_v0, %v176_v52  ;;  %854 = vperm.xlu1 %1860, %v367_v53   ;;  %849 = vperm.xlu0 %1859, %v366_v58   ;;  %v1074_v12 = vmul.f32 %v545_v61, %v49_v62  ;;  %v55_v58 = vld [vmem:[%s3323_s0 + $0x108] sm:$0xff] }
  0xb3   :  { %v1352_v5 = vadd.f32 %v1351_v1, %v1350_v59  ;;  %v1613_v6 = vadd.f32 %v1612_v2, %v1611_v60  ;;  %v1202_v13 = vmul.f32 %v545_v61, %v177_v63  ;;  %v183_v59 = vld [vmem:[%s3323_s0 + $0x508] sm:$0xff] }
  0xb4   :  { %v1355_v21 = vsel %vm1303_vm0, %v1073_v3, 0.0  ;;  %v1616_v22 = vsel %vm1303_vm0, %v1201_v4, 0.0  ;;  %v1357_v30 = vsel %vm1303_vm0, %v1074_v12, 0.0  ;;  %v56_v3 = vld [vmem:[%s3323_s0 + $0x110] sm:$0xff] }
  0xb5   :  { %v1354_v15 = vadd.f32 %v1353_v10, %v1352_v5  ;;  %v1615_v16 = vadd.f32 %v1614_v11, %v1613_v6  ;;  %v555_v17 = vpop.permute.xlu1 %554  ;;  %v550_v20 = vpop.permute.xlu0 %549  ;;  %v1618_v31 = vsel %vm1303_vm0, %v1202_v13, 0.0  ;;  %v184_v4 = vld [vmem:[%s3323_s0 + $0x510] sm:$0xff]  ;;  %v375_v5 = vld [vmem:[%s3324_s1 + $0x308] sm:$0xff]  ;;  %v374_v10 = vld [vmem:[%s3324_s1 + $0x300] sm:$0xff] }
  0xb6   :  { %v1075_v23 = vmul.f32 %v550_v20, %v50_v7  ;;  %v1203_v24 = vmul.f32 %v550_v20, %v178_v8  ;;  %864 = vperm.xlu1 %1860, %v369_v9   ;;  %859 = vperm.xlu0 %1859, %v368_v14   ;;  %v1076_v32 = vmul.f32 %v555_v17, %v51_v18  ;;  %v57_v14 = vld [vmem:[%s3323_s0 + $0x118] sm:$0xff] }
  0xb7   :  { %v1356_v25 = vadd.f32 %v1355_v21, %v1354_v15  ;;  %v1617_v26 = vadd.f32 %v1616_v22, %v1615_v16  ;;  %v1204_v33 = vmul.f32 %v555_v17, %v179_v19  ;;  %v185_v15 = vld [vmem:[%s3323_s0 + $0x518] sm:$0xff] }
  0xb8   :  { %v1359_v41 = vsel %vm1303_vm0, %v1075_v23, 0.0  ;;  %v1620_v42 = vsel %vm1303_vm0, %v1203_v24, 0.0  ;;  %v1361_v50 = vsel %vm1303_vm0, %v1076_v32, 0.0  ;;  %v58_v23 = vld [vmem:[%s3323_s0 + $0x120] sm:$0xff] }
  0xb9   :  { %v1358_v35 = vadd.f32 %v1357_v30, %v1356_v25  ;;  %v1619_v36 = vadd.f32 %v1618_v31, %v1617_v26  ;;  %v565_v37 = vpop.permute.xlu1 %564  ;;  %v560_v40 = vpop.permute.xlu0 %559  ;;  %v1622_v51 = vsel %vm1303_vm0, %v1204_v33, 0.0  ;;  %v186_v24 = vld [vmem:[%s3323_s0 + $0x520] sm:$0xff]  ;;  %v377_v25 = vld [vmem:[%s3324_s1 + $0x318] sm:$0xff]  ;;  %v376_v30 = vld [vmem:[%s3324_s1 + $0x310] sm:$0xff] }
  0xba   :  { %v1077_v43 = vmul.f32 %v560_v40, %v52_v27  ;;  %v1205_v44 = vmul.f32 %v560_v40, %v180_v28  ;;  %874 = vperm.xlu1 %1860, %v371_v29   ;;  %869 = vperm.xlu0 %1859, %v370_v34   ;;  %v1078_v52 = vmul.f32 %v565_v37, %v53_v38  ;;  %v59_v34 = vld [vmem:[%s3323_s0 + $0x128] sm:$0xff] }
  0xbb   :  { %v1360_v45 = vadd.f32 %v1359_v41, %v1358_v35  ;;  %v1621_v46 = vadd.f32 %v1620_v42, %v1619_v36  ;;  %v1206_v53 = vmul.f32 %v565_v37, %v181_v39  ;;  %v187_v35 = vld [vmem:[%s3323_s0 + $0x528] sm:$0xff] }
  0xbc   :  { %v1363_v61 = vsel %vm1303_vm0, %v1077_v43, 0.0  ;;  %v1624_v62 = vsel %vm1303_vm0, %v1205_v44, 0.0  ;;  %v1365_v6 = vsel %vm1303_vm0, %v1078_v52, 0.0  ;;  %v60_v43 = vld [vmem:[%s3323_s0 + $0x130] sm:$0xff] }
  0xbd   :  { %v1362_v55 = vadd.f32 %v1361_v50, %v1360_v45  ;;  %v1623_v56 = vadd.f32 %v1622_v51, %v1621_v46  ;;  %v575_v57 = vpop.permute.xlu1 %574  ;;  %v570_v60 = vpop.permute.xlu0 %569  ;;  %v1626_v7 = vsel %vm1303_vm0, %v1206_v53, 0.0  ;;  %v188_v44 = vld [vmem:[%s3323_s0 + $0x530] sm:$0xff]  ;;  %v379_v45 = vld [vmem:[%s3324_s1 + $0x328] sm:$0xff]  ;;  %v378_v50 = vld [vmem:[%s3324_s1 + $0x320] sm:$0xff] }
  0xbe   :  { %v1079_v63 = vmul.f32 %v570_v60, %v54_v47  ;;  %v1207_v0 = vmul.f32 %v570_v60, %v182_v48  ;;  %884 = vperm.xlu1 %1860, %v373_v49   ;;  %879 = vperm.xlu0 %1859, %v372_v54   ;;  %v1080_v8 = vmul.f32 %v575_v57, %v55_v58  ;;  %v61_v54 = vld [vmem:[%s3323_s0 + $0x138] sm:$0xff] }
  0xbf   :  { %v1364_v1 = vadd.f32 %v1363_v61, %v1362_v55  ;;  %v1625_v2 = vadd.f32 %v1624_v62, %v1623_v56  ;;  %v1208_v9 = vmul.f32 %v575_v57, %v183_v59  ;;  %v189_v55 = vld [vmem:[%s3323_s0 + $0x538] sm:$0xff] }
  0xc0   :  { %v1367_v17 = vsel %vm1303_vm0, %v1079_v63, 0.0  ;;  %v1628_v18 = vsel %vm1303_vm0, %v1207_v0, 0.0  ;;  %v1369_v26 = vsel %vm1303_vm0, %v1080_v8, 0.0  ;;  %v62_v63 = vld [vmem:[%s3323_s0 + $0x140] sm:$0xff] }
  0xc1   :  { %v1366_v11 = vadd.f32 %v1365_v6, %v1364_v1  ;;  %v1627_v12 = vadd.f32 %v1626_v7, %v1625_v2  ;;  %v585_v13 = vpop.permute.xlu1 %584  ;;  %v580_v16 = vpop.permute.xlu0 %579  ;;  %v1630_v27 = vsel %vm1303_vm0, %v1208_v9, 0.0  ;;  %v190_v0 = vld [vmem:[%s3323_s0 + $0x540] sm:$0xff]  ;;  %v381_v1 = vld [vmem:[%s3324_s1 + $0x338] sm:$0xff]  ;;  %v380_v6 = vld [vmem:[%s3324_s1 + $0x330] sm:$0xff] }
  0xc2   :  { %v1081_v19 = vmul.f32 %v580_v16, %v56_v3  ;;  %v1209_v20 = vmul.f32 %v580_v16, %v184_v4  ;;  %894 = vperm.xlu1 %1860, %v375_v5   ;;  %889 = vperm.xlu0 %1859, %v374_v10   ;;  %v1082_v28 = vmul.f32 %v585_v13, %v57_v14  ;;  %v63_v10 = vld [vmem:[%s3323_s0 + $0x148] sm:$0xff] }
  0xc3   :  { %v1368_v21 = vadd.f32 %v1367_v17, %v1366_v11  ;;  %v1629_v22 = vadd.f32 %v1628_v18, %v1627_v12  ;;  %v1210_v29 = vmul.f32 %v585_v13, %v185_v15  ;;  %v191_v11 = vld [vmem:[%s3323_s0 + $0x548] sm:$0xff] }
  0xc4   :  { %v1371_v37 = vsel %vm1303_vm0, %v1081_v19, 0.0  ;;  %v1632_v38 = vsel %vm1303_vm0, %v1209_v20, 0.0  ;;  %v1373_v46 = vsel %vm1303_vm0, %v1082_v28, 0.0  ;;  %v64_v19 = vld [vmem:[%s3323_s0 + $0x150] sm:$0xff] }
  0xc5   :  { %v1370_v31 = vadd.f32 %v1369_v26, %v1368_v21  ;;  %v1631_v32 = vadd.f32 %v1630_v27, %v1629_v22  ;;  %v595_v33 = vpop.permute.xlu1 %594  ;;  %v590_v36 = vpop.permute.xlu0 %589  ;;  %v1634_v47 = vsel %vm1303_vm0, %v1210_v29, 0.0  ;;  %v192_v20 = vld [vmem:[%s3323_s0 + $0x550] sm:$0xff]  ;;  %v383_v21 = vld [vmem:[%s3324_s1 + $0x348] sm:$0xff]  ;;  %v382_v26 = vld [vmem:[%s3324_s1 + $0x340] sm:$0xff] }
  0xc6   :  { %v1083_v39 = vmul.f32 %v590_v36, %v58_v23  ;;  %v1211_v40 = vmul.f32 %v590_v36, %v186_v24  ;;  %904 = vperm.xlu1 %1860, %v377_v25   ;;  %899 = vperm.xlu0 %1859, %v376_v30   ;;  %v1084_v48 = vmul.f32 %v595_v33, %v59_v34  ;;  %v65_v30 = vld [vmem:[%s3323_s0 + $0x158] sm:$0xff] }
  0xc7   :  { %v1372_v41 = vadd.f32 %v1371_v37, %v1370_v31  ;;  %v1633_v42 = vadd.f32 %v1632_v38, %v1631_v32  ;;  %v1212_v49 = vmul.f32 %v595_v33, %v187_v35  ;;  %v193_v31 = vld [vmem:[%s3323_s0 + $0x558] sm:$0xff] }
  0xc8   :  { %v1375_v57 = vsel %vm1303_vm0, %v1083_v39, 0.0  ;;  %v1636_v58 = vsel %vm1303_vm0, %v1211_v40, 0.0  ;;  %v1377_v2 = vsel %vm1303_vm0, %v1084_v48, 0.0  ;;  %v66_v39 = vld [vmem:[%s3323_s0 + $0x160] sm:$0xff] }
  0xc9   :  { %v1374_v51 = vadd.f32 %v1373_v46, %v1372_v41  ;;  %v1635_v52 = vadd.f32 %v1634_v47, %v1633_v42  ;;  %v605_v53 = vpop.permute.xlu1 %604  ;;  %v600_v56 = vpop.permute.xlu0 %599  ;;  %v1638_v3 = vsel %vm1303_vm0, %v1212_v49, 0.0  ;;  %v194_v40 = vld [vmem:[%s3323_s0 + $0x560] sm:$0xff]  ;;  %v385_v41 = vld [vmem:[%s3324_s1 + $0x358] sm:$0xff]  ;;  %v384_v46 = vld [vmem:[%s3324_s1 + $0x350] sm:$0xff] }
  0xca   :  { %v1085_v59 = vmul.f32 %v600_v56, %v60_v43  ;;  %v1213_v60 = vmul.f32 %v600_v56, %v188_v44  ;;  %914 = vperm.xlu1 %1860, %v379_v45   ;;  %909 = vperm.xlu0 %1859, %v378_v50   ;;  %v1086_v4 = vmul.f32 %v605_v53, %v61_v54  ;;  %v67_v50 = vld [vmem:[%s3323_s0 + $0x168] sm:$0xff] }
  0xcb   :  { %v1376_v61 = vadd.f32 %v1375_v57, %v1374_v51  ;;  %v1637_v62 = vadd.f32 %v1636_v58, %v1635_v52  ;;  %v1214_v5 = vmul.f32 %v605_v53, %v189_v55  ;;  %v195_v51 = vld [vmem:[%s3323_s0 + $0x568] sm:$0xff] }
  0xcc   :  { %v1379_v13 = vsel %vm1303_vm0, %v1085_v59, 0.0  ;;  %v1640_v14 = vsel %vm1303_vm0, %v1213_v60, 0.0  ;;  %v1381_v22 = vsel %vm1303_vm0, %v1086_v4, 0.0  ;;  %v68_v59 = vld [vmem:[%s3323_s0 + $0x170] sm:$0xff] }
  0xcd   :  { %v1378_v7 = vadd.f32 %v1377_v2, %v1376_v61  ;;  %v1639_v8 = vadd.f32 %v1638_v3, %v1637_v62  ;;  %v615_v9 = vpop.permute.xlu1 %614  ;;  %v610_v12 = vpop.permute.xlu0 %609  ;;  %v1642_v23 = vsel %vm1303_vm0, %v1214_v5, 0.0  ;;  %v196_v60 = vld [vmem:[%s3323_s0 + $0x570] sm:$0xff]  ;;  %v387_v61 = vld [vmem:[%s3324_s1 + $0x368] sm:$0xff]  ;;  %v386_v2 = vld [vmem:[%s3324_s1 + $0x360] sm:$0xff] }
  0xce   :  { %v1087_v15 = vmul.f32 %v610_v12, %v62_v63  ;;  %v1215_v16 = vmul.f32 %v610_v12, %v190_v0  ;;  %924 = vperm.xlu1 %1860, %v381_v1   ;;  %919 = vperm.xlu0 %1859, %v380_v6   ;;  %v1088_v24 = vmul.f32 %v615_v9, %v63_v10  ;;  %v69_v6 = vld [vmem:[%s3323_s0 + $0x178] sm:$0xff] }
  0xcf   :  { %v1380_v17 = vadd.f32 %v1379_v13, %v1378_v7  ;;  %v1641_v18 = vadd.f32 %v1640_v14, %v1639_v8  ;;  %v1216_v25 = vmul.f32 %v615_v9, %v191_v11  ;;  %v197_v7 = vld [vmem:[%s3323_s0 + $0x578] sm:$0xff] }
  0xd0   :  { %v1383_v33 = vsel %vm1303_vm0, %v1087_v15, 0.0  ;;  %v1644_v34 = vsel %vm1303_vm0, %v1215_v16, 0.0  ;;  %v1385_v42 = vsel %vm1303_vm0, %v1088_v24, 0.0  ;;  %v70_v15 = vld [vmem:[%s3323_s0 + $0x180] sm:$0xff] }
  0xd1   :  { %v1382_v27 = vadd.f32 %v1381_v22, %v1380_v17  ;;  %v1643_v28 = vadd.f32 %v1642_v23, %v1641_v18  ;;  %v625_v29 = vpop.permute.xlu1 %624  ;;  %v620_v32 = vpop.permute.xlu0 %619  ;;  %v1646_v43 = vsel %vm1303_vm0, %v1216_v25, 0.0  ;;  %v198_v16 = vld [vmem:[%s3323_s0 + $0x580] sm:$0xff]  ;;  %v389_v17 = vld [vmem:[%s3324_s1 + $0x378] sm:$0xff]  ;;  %v388_v22 = vld [vmem:[%s3324_s1 + $0x370] sm:$0xff] }
  0xd2   :  { %v1089_v35 = vmul.f32 %v620_v32, %v64_v19  ;;  %v1217_v36 = vmul.f32 %v620_v32, %v192_v20  ;;  %934 = vperm.xlu1 %1860, %v383_v21   ;;  %929 = vperm.xlu0 %1859, %v382_v26   ;;  %v1090_v44 = vmul.f32 %v625_v29, %v65_v30  ;;  %v71_v26 = vld [vmem:[%s3323_s0 + $0x188] sm:$0xff] }
  0xd3   :  { %v1384_v37 = vadd.f32 %v1383_v33, %v1382_v27  ;;  %v1645_v38 = vadd.f32 %v1644_v34, %v1643_v28  ;;  %v1218_v45 = vmul.f32 %v625_v29, %v193_v31  ;;  %v199_v27 = vld [vmem:[%s3323_s0 + $0x588] sm:$0xff] }
  0xd4   :  { %v1387_v53 = vsel %vm1303_vm0, %v1089_v35, 0.0  ;;  %v1648_v54 = vsel %vm1303_vm0, %v1217_v36, 0.0  ;;  %v1389_v62 = vsel %vm1303_vm0, %v1090_v44, 0.0  ;;  %v72_v35 = vld [vmem:[%s3323_s0 + $0x190] sm:$0xff] }
  0xd5   :  { %v1386_v47 = vadd.f32 %v1385_v42, %v1384_v37  ;;  %v1647_v48 = vadd.f32 %v1646_v43, %v1645_v38  ;;  %v635_v49 = vpop.permute.xlu1 %634  ;;  %v630_v52 = vpop.permute.xlu0 %629  ;;  %v1650_v63 = vsel %vm1303_vm0, %v1218_v45, 0.0  ;;  %v200_v36 = vld [vmem:[%s3323_s0 + $0x590] sm:$0xff]  ;;  %v391_v37 = vld [vmem:[%s3324_s1 + $0x388] sm:$0xff]  ;;  %v390_v42 = vld [vmem:[%s3324_s1 + $0x380] sm:$0xff] }
  0xd6   :  { %v1091_v55 = vmul.f32 %v630_v52, %v66_v39  ;;  %v1219_v56 = vmul.f32 %v630_v52, %v194_v40  ;;  %944 = vperm.xlu1 %1860, %v385_v41   ;;  %939 = vperm.xlu0 %1859, %v384_v46   ;;  %v1092_v0 = vmul.f32 %v635_v49, %v67_v50  ;;  %v73_v46 = vld [vmem:[%s3323_s0 + $0x198] sm:$0xff] }
  0xd7   :  { %v1388_v57 = vadd.f32 %v1387_v53, %v1386_v47  ;;  %v1649_v58 = vadd.f32 %v1648_v54, %v1647_v48  ;;  %v1220_v1 = vmul.f32 %v635_v49, %v195_v51  ;;  %v201_v47 = vld [vmem:[%s3323_s0 + $0x598] sm:$0xff] }
  0xd8   :  { %v1391_v9 = vsel %vm1303_vm0, %v1091_v55, 0.0  ;;  %v1652_v10 = vsel %vm1303_vm0, %v1219_v56, 0.0  ;;  %v1393_v18 = vsel %vm1303_vm0, %v1092_v0, 0.0  ;;  %v74_v55 = vld [vmem:[%s3323_s0 + $0x1a0] sm:$0xff] }
  0xd9   :  { %v1390_v3 = vadd.f32 %v1389_v62, %v1388_v57  ;;  %v1651_v4 = vadd.f32 %v1650_v63, %v1649_v58  ;;  %v645_v5 = vpop.permute.xlu1 %644  ;;  %v640_v8 = vpop.permute.xlu0 %639  ;;  %v1654_v19 = vsel %vm1303_vm0, %v1220_v1, 0.0  ;;  %v202_v56 = vld [vmem:[%s3323_s0 + $0x5a0] sm:$0xff]  ;;  %v393_v57 = vld [vmem:[%s3324_s1 + $0x398] sm:$0xff]  ;;  %v392_v62 = vld [vmem:[%s3324_s1 + $0x390] sm:$0xff] }
  0xda   :  { %v1093_v11 = vmul.f32 %v640_v8, %v68_v59  ;;  %v1221_v12 = vmul.f32 %v640_v8, %v196_v60  ;;  %954 = vperm.xlu1 %1860, %v387_v61   ;;  %949 = vperm.xlu0 %1859, %v386_v2   ;;  %v1094_v20 = vmul.f32 %v645_v5, %v69_v6  ;;  %v75_v2 = vld [vmem:[%s3323_s0 + $0x1a8] sm:$0xff] }
  0xdb   :  { %v1392_v13 = vadd.f32 %v1391_v9, %v1390_v3  ;;  %v1653_v14 = vadd.f32 %v1652_v10, %v1651_v4  ;;  %v1222_v21 = vmul.f32 %v645_v5, %v197_v7  ;;  %v203_v3 = vld [vmem:[%s3323_s0 + $0x5a8] sm:$0xff] }
  0xdc   :  { %v1395_v29 = vsel %vm1303_vm0, %v1093_v11, 0.0  ;;  %v1656_v30 = vsel %vm1303_vm0, %v1221_v12, 0.0  ;;  %v1397_v38 = vsel %vm1303_vm0, %v1094_v20, 0.0  ;;  %v76_v11 = vld [vmem:[%s3323_s0 + $0x1b0] sm:$0xff] }
  0xdd   :  { %v1394_v23 = vadd.f32 %v1393_v18, %v1392_v13  ;;  %v1655_v24 = vadd.f32 %v1654_v19, %v1653_v14  ;;  %v655_v25 = vpop.permute.xlu1 %654  ;;  %v650_v28 = vpop.permute.xlu0 %649  ;;  %v1658_v39 = vsel %vm1303_vm0, %v1222_v21, 0.0  ;;  %v204_v12 = vld [vmem:[%s3323_s0 + $0x5b0] sm:$0xff]  ;;  %v395_v13 = vld [vmem:[%s3324_s1 + $0x3a8] sm:$0xff]  ;;  %v394_v18 = vld [vmem:[%s3324_s1 + $0x3a0] sm:$0xff] }
  0xde   :  { %v1095_v31 = vmul.f32 %v650_v28, %v70_v15  ;;  %v1223_v32 = vmul.f32 %v650_v28, %v198_v16  ;;  %964 = vperm.xlu1 %1860, %v389_v17   ;;  %959 = vperm.xlu0 %1859, %v388_v22   ;;  %v1096_v40 = vmul.f32 %v655_v25, %v71_v26  ;;  %v77_v22 = vld [vmem:[%s3323_s0 + $0x1b8] sm:$0xff] }
  0xdf   :  { %v1396_v33 = vadd.f32 %v1395_v29, %v1394_v23  ;;  %v1657_v34 = vadd.f32 %v1656_v30, %v1655_v24  ;;  %v1224_v41 = vmul.f32 %v655_v25, %v199_v27  ;;  %v205_v23 = vld [vmem:[%s3323_s0 + $0x5b8] sm:$0xff] }
  0xe0   :  { %v1399_v49 = vsel %vm1303_vm0, %v1095_v31, 0.0  ;;  %v1660_v50 = vsel %vm1303_vm0, %v1223_v32, 0.0  ;;  %v1401_v58 = vsel %vm1303_vm0, %v1096_v40, 0.0  ;;  %v78_v31 = vld [vmem:[%s3323_s0 + $0x1c0] sm:$0xff] }
  0xe1   :  { %v1398_v43 = vadd.f32 %v1397_v38, %v1396_v33  ;;  %v1659_v44 = vadd.f32 %v1658_v39, %v1657_v34  ;;  %v665_v45 = vpop.permute.xlu1 %664  ;;  %v660_v48 = vpop.permute.xlu0 %659  ;;  %v1662_v59 = vsel %vm1303_vm0, %v1224_v41, 0.0  ;;  %v206_v32 = vld [vmem:[%s3323_s0 + $0x5c0] sm:$0xff]  ;;  %v397_v33 = vld [vmem:[%s3324_s1 + $0x3b8] sm:$0xff]  ;;  %v396_v38 = vld [vmem:[%s3324_s1 + $0x3b0] sm:$0xff] }
  0xe2   :  { %v1097_v51 = vmul.f32 %v660_v48, %v72_v35  ;;  %v1225_v52 = vmul.f32 %v660_v48, %v200_v36  ;;  %974 = vperm.xlu1 %1860, %v391_v37   ;;  %969 = vperm.xlu0 %1859, %v390_v42   ;;  %v1098_v60 = vmul.f32 %v665_v45, %v73_v46  ;;  %v79_v42 = vld [vmem:[%s3323_s0 + $0x1c8] sm:$0xff] }
  0xe3   :  { %v1400_v53 = vadd.f32 %v1399_v49, %v1398_v43  ;;  %v1661_v54 = vadd.f32 %v1660_v50, %v1659_v44  ;;  %v1226_v61 = vmul.f32 %v665_v45, %v201_v47  ;;  %v207_v43 = vld [vmem:[%s3323_s0 + $0x5c8] sm:$0xff] }
  0xe4   :  { %v1403_v5 = vsel %vm1303_vm0, %v1097_v51, 0.0  ;;  %v1664_v6 = vsel %vm1303_vm0, %v1225_v52, 0.0  ;;  %v1405_v14 = vsel %vm1303_vm0, %v1098_v60, 0.0  ;;  %v80_v51 = vld [vmem:[%s3323_s0 + $0x1d0] sm:$0xff] }
  0xe5   :  { %v1402_v63 = vadd.f32 %v1401_v58, %v1400_v53  ;;  %v1663_v0 = vadd.f32 %v1662_v59, %v1661_v54  ;;  %v675_v1 = vpop.permute.xlu1 %674  ;;  %v670_v4 = vpop.permute.xlu0 %669  ;;  %v1666_v15 = vsel %vm1303_vm0, %v1226_v61, 0.0  ;;  %v208_v52 = vld [vmem:[%s3323_s0 + $0x5d0] sm:$0xff]  ;;  %v399_v53 = vld [vmem:[%s3324_s1 + $0x3c8] sm:$0xff]  ;;  %v398_v58 = vld [vmem:[%s3324_s1 + $0x3c0] sm:$0xff] }
  0xe6   :  { %v1099_v7 = vmul.f32 %v670_v4, %v74_v55  ;;  %v1227_v8 = vmul.f32 %v670_v4, %v202_v56  ;;  %984 = vperm.xlu1 %1860, %v393_v57   ;;  %979 = vperm.xlu0 %1859, %v392_v62   ;;  %v1100_v16 = vmul.f32 %v675_v1, %v75_v2  ;;  %v81_v62 = vld [vmem:[%s3323_s0 + $0x1d8] sm:$0xff] }
  0xe7   :  { %v1404_v9 = vadd.f32 %v1403_v5, %v1402_v63  ;;  %v1665_v10 = vadd.f32 %v1664_v6, %v1663_v0  ;;  %v1228_v17 = vmul.f32 %v675_v1, %v203_v3  ;;  %v209_v63 = vld [vmem:[%s3323_s0 + $0x5d8] sm:$0xff] }
  0xe8   :  { %v1407_v25 = vsel %vm1303_vm0, %v1099_v7, 0.0  ;;  %v1668_v26 = vsel %vm1303_vm0, %v1227_v8, 0.0  ;;  %v1409_v34 = vsel %vm1303_vm0, %v1100_v16, 0.0  ;;  %v82_v7 = vld [vmem:[%s3323_s0 + $0x1e0] sm:$0xff] }
  0xe9   :  { %v1406_v19 = vadd.f32 %v1405_v14, %v1404_v9  ;;  %v1667_v20 = vadd.f32 %v1666_v15, %v1665_v10  ;;  %v685_v21 = vpop.permute.xlu1 %684  ;;  %v680_v24 = vpop.permute.xlu0 %679  ;;  %v1670_v35 = vsel %vm1303_vm0, %v1228_v17, 0.0  ;;  %v210_v8 = vld [vmem:[%s3323_s0 + $0x5e0] sm:$0xff]  ;;  %v401_v9 = vld [vmem:[%s3324_s1 + $0x3d8] sm:$0xff]  ;;  %v400_v14 = vld [vmem:[%s3324_s1 + $0x3d0] sm:$0xff] }
  0xea   :  { %v1101_v27 = vmul.f32 %v680_v24, %v76_v11  ;;  %v1229_v28 = vmul.f32 %v680_v24, %v204_v12  ;;  %994 = vperm.xlu1 %1860, %v395_v13   ;;  %989 = vperm.xlu0 %1859, %v394_v18   ;;  %v1102_v36 = vmul.f32 %v685_v21, %v77_v22  ;;  %v83_v18 = vld [vmem:[%s3323_s0 + $0x1e8] sm:$0xff] }
  0xeb   :  { %v1408_v29 = vadd.f32 %v1407_v25, %v1406_v19  ;;  %v1669_v30 = vadd.f32 %v1668_v26, %v1667_v20  ;;  %v1230_v37 = vmul.f32 %v685_v21, %v205_v23  ;;  %v211_v19 = vld [vmem:[%s3323_s0 + $0x5e8] sm:$0xff] }
  0xec   :  { %v1411_v45 = vsel %vm1303_vm0, %v1101_v27, 0.0  ;;  %v1672_v46 = vsel %vm1303_vm0, %v1229_v28, 0.0  ;;  %v1413_v54 = vsel %vm1303_vm0, %v1102_v36, 0.0  ;;  %v403_v27 = vld [vmem:[%s3324_s1 + $0x3e8] sm:$0xff] }
  0xed   :  { %v1410_v39 = vadd.f32 %v1409_v34, %v1408_v29  ;;  %v1671_v40 = vadd.f32 %v1670_v35, %v1669_v30  ;;  %v695_v41 = vpop.permute.xlu1 %694  ;;  %v690_v44 = vpop.permute.xlu0 %689  ;;  %v1674_v55 = vsel %vm1303_vm0, %v1230_v37, 0.0  ;;  %v402_v34 = vld [vmem:[%s3324_s1 + $0x3e0] sm:$0xff] }
  0xee   :  { %v1103_v47 = vmul.f32 %v690_v44, %v78_v31  ;;  %v1231_v48 = vmul.f32 %v690_v44, %v206_v32  ;;  %1004 = vperm.xlu1 %1860, %v397_v33   ;;  %999 = vperm.xlu0 %1859, %v396_v38   ;;  %v1104_v56 = vmul.f32 %v695_v41, %v79_v42  ;;  %v84_v32 = vld [vmem:[%s3323_s0 + $0x1f0] sm:$0xff]  ;;  %v85_v38 = vld [vmem:[%s3323_s0 + $0x1f8] sm:$0xff] }
  0xef   :  { %v1412_v49 = vadd.f32 %v1411_v45, %v1410_v39  ;;  %v1673_v50 = vadd.f32 %v1672_v46, %v1671_v40  ;;  %v1232_v57 = vmul.f32 %v695_v41, %v207_v43  ;;  %v212_v33 = vld [vmem:[%s3323_s0 + $0x5f0] sm:$0xff]  ;;  %v213_v39 = vld [vmem:[%s3323_s0 + $0x5f8] sm:$0xff] }
  0xf0   :  { %v1415_v1 = vsel %vm1303_vm0, %v1103_v47, 0.0  ;;  %v1676_v2 = vsel %vm1303_vm0, %v1231_v48, 0.0  ;;  %v1417_v10 = vsel %vm1303_vm0, %v1104_v56, 0.0  ;;  %v405_v47 = vld [vmem:[%s3324_s1 + $0x3f8] sm:$0xff] }
  0xf1   :  { %v1414_v59 = vadd.f32 %v1413_v54, %v1412_v49  ;;  %v1675_v60 = vadd.f32 %v1674_v55, %v1673_v50  ;;  %v705_v61 = vpop.permute.xlu1 %704  ;;  %v700_v0 = vpop.permute.xlu0 %699  ;;  %v1678_v11 = vsel %vm1303_vm0, %v1232_v57, 0.0  ;;  %v404_v54 = vld [vmem:[%s3324_s1 + $0x3f0] sm:$0xff] }
  0xf2   :  { %v1105_v3 = vmul.f32 %v700_v0, %v80_v51  ;;  %v1233_v4 = vmul.f32 %v700_v0, %v208_v52  ;;  %1014 = vperm.xlu1 %1860, %v399_v53   ;;  %1009 = vperm.xlu0 %1859, %v398_v58   ;;  %v1106_v12 = vmul.f32 %v705_v61, %v81_v62  ;;  %v86_v52 = vld [vmem:[%s3323_s0 + $0x200] sm:$0xff]  ;;  %v87_v58 = vld [vmem:[%s3323_s0 + $0x208] sm:$0xff] }
  0xf3   :  { %v1416_v5 = vadd.f32 %v1415_v1, %v1414_v59  ;;  %v1677_v6 = vadd.f32 %v1676_v2, %v1675_v60  ;;  %v1234_v13 = vmul.f32 %v705_v61, %v209_v63  ;;  %v214_v53 = vld [vmem:[%s3323_s0 + $0x600] sm:$0xff]  ;;  %v215_v59 = vld [vmem:[%s3323_s0 + $0x608] sm:$0xff] }
  0xf4   :  { %v1419_v21 = vsel %vm1303_vm0, %v1105_v3, 0.0  ;;  %v1680_v22 = vsel %vm1303_vm0, %v1233_v4, 0.0  ;;  %v1421_v28 = vsel %vm1303_vm0, %v1106_v12, 0.0  ;;  %v89_v3 = vld [vmem:[%s3323_s0 + $0x218] sm:$0xff] }
  0xf5   :  { %v1418_v15 = vadd.f32 %v1417_v10, %v1416_v5  ;;  %v1679_v16 = vadd.f32 %v1678_v11, %v1677_v6  ;;  %v715_v17 = vpop.permute.xlu1 %714  ;;  %v710_v20 = vpop.permute.xlu0 %709  ;;  %v1682_v29 = vsel %vm1303_vm0, %v1234_v13, 0.0  ;;  %v217_v4 = vld [vmem:[%s3323_s0 + $0x618] sm:$0xff]  ;;  %v216_v10 = vld [vmem:[%s3323_s0 + $0x610] sm:$0xff] }
  0xf6   :  { %v1107_v23 = vmul.f32 %v710_v20, %v82_v7  ;;  %v1235_v24 = vmul.f32 %v710_v20, %v210_v8  ;;  %1024 = vperm.xlu1 %1860, %v401_v9   ;;  %1019 = vperm.xlu0 %1859, %v400_v14   ;;  %v1108_v30 = vmul.f32 %v715_v17, %v83_v18  ;;  %v88_v9 = vld [vmem:[%s3323_s0 + $0x210] sm:$0xff] }
  0xf7   :  { %v1420_v25 = vadd.f32 %v1419_v21, %v1418_v15  ;;  %v1681_v26 = vadd.f32 %v1680_v22, %v1679_v16  ;;  %v1236_v31 = vmul.f32 %v715_v17, %v211_v19 }
  0xf8   :  { %v1423_v40 = vsel %vm1303_vm0, %v1107_v23, 0.0  ;;  %v1684_v41 = vsel %vm1303_vm0, %v1235_v24, 0.0  ;;  %v1425_v48 = vsel %vm1303_vm0, %v1108_v30, 0.0  ;;  %v91_v30 = vld [vmem:[%s3323_s0 + $0x228] sm:$0xff] }
  0xf9   :  { %v1422_v35 = vadd.f32 %v1421_v28, %v1420_v25  ;;  %v1683_v36 = vadd.f32 %v1682_v29, %v1681_v26  ;;  %v725_v37 = vpop.permute.xlu1 %724  ;;  %v720_v42 = vpop.permute.xlu0 %719  ;;  %v1686_v49 = vsel %vm1303_vm0, %v1236_v31, 0.0  ;;  %v90_v25 = vld [vmem:[%s3323_s0 + $0x220] sm:$0xff]  ;;  %v219_v31 = vld [vmem:[%s3323_s0 + $0x628] sm:$0xff] }
  0xfa   :  { %1034 = vperm.xlu1 %1860, %v403_v27   ;;  %v1109_v45 = vmul.f32 %v720_v42, %v84_v32  ;;  %v1237_v46 = vmul.f32 %v720_v42, %v212_v33  ;;  %1029 = vperm.xlu0 %1859, %v402_v34   ;;  %v1110_v50 = vmul.f32 %v725_v37, %v85_v38  ;;  %v218_v26 = vld [vmem:[%s3323_s0 + $0x620] sm:$0xff] }
  0xfb   :  { %v1424_v43 = vadd.f32 %v1423_v40, %v1422_v35  ;;  %v1685_v44 = vadd.f32 %v1684_v41, %v1683_v36  ;;  %v1238_v51 = vmul.f32 %v725_v37, %v213_v39 }
  0xfc   :  { %v1427_v60 = vsel %vm1303_vm0, %v1109_v45, 0.0  ;;  %v1688_v61 = vsel %vm1303_vm0, %v1237_v46, 0.0  ;;  %v1429_v5 = vsel %vm1303_vm0, %v1110_v50, 0.0  ;;  %v1884_v50 = vmov 0.0  }
  0xfd   :  { %v1426_v55 = vadd.f32 %v1425_v48, %v1424_v43  ;;  %v1687_v56 = vadd.f32 %v1686_v49, %v1685_v44  ;;  %v735_v57 = vpop.permute.xlu1 %734  ;;  %v730_v62 = vpop.permute.xlu0 %729  ;;  %v1690_v6 = vsel %vm1303_vm0, %v1238_v51, 0.0  ;;  %v92_v43 = vld [vmem:[%s3323_s0 + $0x230] sm:$0xff]  ;;  %v93_v48 = vld [vmem:[%s3323_s0 + $0x238] sm:$0xff]  ;;  %21 = vst.msk [vmem:[#allocation2] sm:$0x3] %vm20_vm1, %v1884_v50 }
  0xfe   :  { %1044 = vperm.xlu1 %1860, %v405_v47   ;;  %v1111_v1 = vmul.f32 %v730_v62, %v86_v52  ;;  %v1239_v2 = vmul.f32 %v730_v62, %v214_v53  ;;  %1039 = vperm.xlu0 %1859, %v404_v54   ;;  %v1112_v7 = vmul.f32 %v735_v57, %v87_v58  ;;  %v220_v44 = vld [vmem:[%s3323_s0 + $0x630] sm:$0xff]  ;;  %v221_v49 = vld [vmem:[%s3323_s0 + $0x638] sm:$0xff]  ;;  %v94_v62 = vld [vmem:[%s3323_s0 + $0x240] sm:$0xff] }
  0xff   :  { %v1428_v63 = vadd.f32 %v1427_v60, %v1426_v55  ;;  %v1689_v0 = vadd.f32 %v1688_v61, %v1687_v56  ;;  %v1240_v8 = vmul.f32 %v735_v57, %v215_v59 }
 0x100   :  { %v1431_v14 = vsel %vm1303_vm0, %v1111_v1, 0.0  ;;  %v1692_v15 = vsel %vm1303_vm0, %v1239_v2, 0.0  ;;  %v1433_v23 = vsel %vm1303_vm0, %v1112_v7, 0.0 }
 0x101   :  { %v1430_v11 = vadd.f32 %v1429_v5, %v1428_v63  ;;  %v1691_v12 = vadd.f32 %v1690_v6, %v1689_v0  ;;  %v745_v13 = vpop.permute.xlu1 %744  ;;  %v740_v18 = vpop.permute.xlu0 %739  ;;  %v1694_v24 = vsel %vm1303_vm0, %v1240_v8, 0.0  ;;  %v222_v63 = vld [vmem:[%s3323_s0 + $0x640] sm:$0xff] }
 0x102   :  { %v1114_v16 = vmul.f32 %v745_v13, %v89_v3  ;;  %v1242_v17 = vmul.f32 %v745_v13, %v217_v4  ;;  %v1113_v21 = vmul.f32 %v740_v18, %v88_v9  ;;  %v1241_v22 = vmul.f32 %v740_v18, %v216_v10  ;;  %v95_v3 = vld [vmem:[%s3323_s0 + $0x248] sm:$0xff] }
 0x103   :  { %v1432_v19 = vadd.f32 %v1431_v14, %v1430_v11  ;;  %v1693_v20 = vadd.f32 %v1692_v15, %v1691_v12  ;;  %v223_v4 = vld [vmem:[%s3323_s0 + $0x648] sm:$0xff] }
 0x104   :  { %v1437_v32 = vsel %vm1303_vm0, %v1114_v16, 0.0  ;;  %v1698_v33 = vsel %vm1303_vm0, %v1242_v17, 0.0  ;;  %v1435_v34 = vsel %vm1303_vm0, %v1113_v21, 0.0  ;;  %v1696_v35 = vsel %vm1303_vm0, %v1241_v22, 0.0  ;;  %v96_v16 = vld [vmem:[%s3323_s0 + $0x250] sm:$0xff]  ;;  %v97_v21 = vld [vmem:[%s3323_s0 + $0x258] sm:$0xff] }
 0x105   :  { %v1434_v27 = vadd.f32 %v1433_v23, %v1432_v19  ;;  %v1695_v28 = vadd.f32 %v1694_v24, %v1693_v20  ;;  %v755_v29 = vpop.permute.xlu1 %754  ;;  %v750_v36 = vpop.permute.xlu0 %749  ;;  %v224_v17 = vld [vmem:[%s3323_s0 + $0x650] sm:$0xff]  ;;  %v225_v22 = vld [vmem:[%s3323_s0 + $0x658] sm:$0xff] }
 0x106   :  { %v1115_v39 = vmul.f32 %v750_v36, %v90_v25  ;;  %v1243_v40 = vmul.f32 %v750_v36, %v218_v26  ;;  %v1116_v41 = vmul.f32 %v755_v29, %v91_v30  ;;  %v1244_v42 = vmul.f32 %v755_v29, %v219_v31 }
 0x107   :  { %v1436_v37 = vadd.f32 %v1435_v34, %v1434_v27  ;;  %v1697_v38 = vadd.f32 %v1696_v35, %v1695_v28  ;;  %v98_v34 = vld [vmem:[%s3323_s0 + $0x260] sm:$0xff] }
 0x108   :  { %v1439_v51 = vsel %vm1303_vm0, %v1115_v39, 0.0  ;;  %v1700_v52 = vsel %vm1303_vm0, %v1243_v40, 0.0  ;;  %v1441_v58 = vsel %vm1303_vm0, %v1116_v41, 0.0  ;;  %v1702_v59 = vsel %vm1303_vm0, %v1244_v42, 0.0  ;;  %v226_v35 = vld [vmem:[%s3323_s0 + $0x660] sm:$0xff]  ;;  %v99_v39 = vld [vmem:[%s3323_s0 + $0x268] sm:$0xff] }
 0x109   :  { %v1438_v45 = vadd.f32 %v1437_v32, %v1436_v37  ;;  %v1699_v46 = vadd.f32 %v1698_v33, %v1697_v38  ;;  %v765_v47 = vpop.permute.xlu1 %764  ;;  %v760_v53 = vpop.permute.xlu0 %759  ;;  %v227_v40 = vld [vmem:[%s3323_s0 + $0x668] sm:$0xff] }
 0x10a   :  { %v1117_v56 = vmul.f32 %v760_v53, %v92_v43  ;;  %v1245_v57 = vmul.f32 %v760_v53, %v220_v44  ;;  %v1118_v60 = vmul.f32 %v765_v47, %v93_v48  ;;  %v1246_v61 = vmul.f32 %v765_v47, %v221_v49  ;;  %v228_v53 = vld [vmem:[%s3323_s0 + $0x670] sm:$0xff] }
 0x10b   :  { %v1440_v54 = vadd.f32 %v1439_v51, %v1438_v45  ;;  %v1701_v55 = vadd.f32 %v1700_v52, %v1699_v46  ;;  %v100_v52 = vld [vmem:[%s3323_s0 + $0x270] sm:$0xff] }
 0x10c   :  { %v1443_v5 = vsel %vm1303_vm0, %v1117_v56, 0.0  ;;  %v1704_v6 = vsel %vm1303_vm0, %v1245_v57, 0.0  ;;  %v1445_v12 = vsel %vm1303_vm0, %v1118_v60, 0.0  ;;  %v1706_v13 = vsel %vm1303_vm0, %v1246_v61, 0.0  ;;  %v101_v57 = vld [vmem:[%s3323_s0 + $0x278] sm:$0xff] }
 0x10d   :  { %v1442_v0 = vadd.f32 %v1441_v58, %v1440_v54  ;;  %v1703_v1 = vadd.f32 %v1702_v59, %v1701_v55  ;;  %v775_v2 = vpop.permute.xlu1 %774  ;;  %v770_v7 = vpop.permute.xlu0 %769  ;;  %v229_v58 = vld [vmem:[%s3323_s0 + $0x678] sm:$0xff] }
 0x10e   :  { %v1119_v10 = vmul.f32 %v770_v7, %v94_v62  ;;  %v1247_v11 = vmul.f32 %v770_v7, %v222_v63  ;;  %v1120_v14 = vmul.f32 %v775_v2, %v95_v3  ;;  %v1248_v15 = vmul.f32 %v775_v2, %v223_v4  ;;  %v230_v7 = vld [vmem:[%s3323_s0 + $0x680] sm:$0xff] }
 0x10f   :  { %v1444_v8 = vadd.f32 %v1443_v5, %v1442_v0  ;;  %v1705_v9 = vadd.f32 %v1704_v6, %v1703_v1  ;;  %v102_v6 = vld [vmem:[%s3323_s0 + $0x280] sm:$0xff] }
 0x110   :  { %v1447_v23 = vsel %vm1303_vm0, %v1119_v10, 0.0  ;;  %v1708_v24 = vsel %vm1303_vm0, %v1247_v11, 0.0  ;;  %v1449_v30 = vsel %vm1303_vm0, %v1120_v14, 0.0  ;;  %v1710_v31 = vsel %vm1303_vm0, %v1248_v15, 0.0  ;;  %v103_v11 = vld [vmem:[%s3323_s0 + $0x288] sm:$0xff] }
 0x111   :  { %v1446_v18 = vadd.f32 %v1445_v12, %v1444_v8  ;;  %v1707_v19 = vadd.f32 %v1706_v13, %v1705_v9  ;;  %v785_v20 = vpop.permute.xlu1 %784  ;;  %v780_v25 = vpop.permute.xlu0 %779  ;;  %v231_v12 = vld [vmem:[%s3323_s0 + $0x688] sm:$0xff] }
 0x112   :  { %v1121_v28 = vmul.f32 %v780_v25, %v96_v16  ;;  %v1249_v29 = vmul.f32 %v780_v25, %v224_v17  ;;  %v1122_v32 = vmul.f32 %v785_v20, %v97_v21  ;;  %v1250_v33 = vmul.f32 %v785_v20, %v225_v22  ;;  %v232_v25 = vld [vmem:[%s3323_s0 + $0x690] sm:$0xff] }
 0x113   :  { %v1448_v26 = vadd.f32 %v1447_v23, %v1446_v18  ;;  %v1709_v27 = vadd.f32 %v1708_v24, %v1707_v19  ;;  %v104_v24 = vld [vmem:[%s3323_s0 + $0x290] sm:$0xff] }
 0x114   :  { %v1451_v41 = vsel %vm1303_vm0, %v1121_v28, 0.0  ;;  %v1712_v42 = vsel %vm1303_vm0, %v1249_v29, 0.0  ;;  %v1453_v48 = vsel %vm1303_vm0, %v1122_v32, 0.0  ;;  %v1714_v49 = vsel %vm1303_vm0, %v1250_v33, 0.0  ;;  %v105_v29 = vld [vmem:[%s3323_s0 + $0x298] sm:$0xff] }
 0x115   :  { %v1450_v36 = vadd.f32 %v1449_v30, %v1448_v26  ;;  %v1711_v37 = vadd.f32 %v1710_v31, %v1709_v27  ;;  %v795_v38 = vpop.permute.xlu1 %794  ;;  %v790_v43 = vpop.permute.xlu0 %789  ;;  %v233_v30 = vld [vmem:[%s3323_s0 + $0x698] sm:$0xff] }
 0x116   :  { %v1123_v46 = vmul.f32 %v790_v43, %v98_v34  ;;  %v1251_v47 = vmul.f32 %v790_v43, %v226_v35  ;;  %v1124_v50 = vmul.f32 %v795_v38, %v99_v39  ;;  %v1252_v51 = vmul.f32 %v795_v38, %v227_v40  ;;  %v234_v43 = vld [vmem:[%s3323_s0 + $0x6a0] sm:$0xff] }
 0x117   :  { %v1452_v44 = vadd.f32 %v1451_v41, %v1450_v36  ;;  %v1713_v45 = vadd.f32 %v1712_v42, %v1711_v37  ;;  %v106_v42 = vld [vmem:[%s3323_s0 + $0x2a0] sm:$0xff] }
 0x118   :  { %v1455_v59 = vsel %vm1303_vm0, %v1123_v46, 0.0  ;;  %v1716_v60 = vsel %vm1303_vm0, %v1251_v47, 0.0  ;;  %v1457_v2 = vsel %vm1303_vm0, %v1124_v50, 0.0  ;;  %v1718_v3 = vsel %vm1303_vm0, %v1252_v51, 0.0  ;;  %v107_v47 = vld [vmem:[%s3323_s0 + $0x2a8] sm:$0xff] }
 0x119   :  { %v1454_v54 = vadd.f32 %v1453_v48, %v1452_v44  ;;  %v1715_v55 = vadd.f32 %v1714_v49, %v1713_v45  ;;  %v805_v56 = vpop.permute.xlu1 %804  ;;  %v800_v61 = vpop.permute.xlu0 %799  ;;  %v235_v48 = vld [vmem:[%s3323_s0 + $0x6a8] sm:$0xff] }
 0x11a   :  { %v1125_v0 = vmul.f32 %v800_v61, %v100_v52  ;;  %v1253_v1 = vmul.f32 %v800_v61, %v228_v53  ;;  %v1126_v4 = vmul.f32 %v805_v56, %v101_v57  ;;  %v1254_v5 = vmul.f32 %v805_v56, %v229_v58  ;;  %v236_v61 = vld [vmem:[%s3323_s0 + $0x6b0] sm:$0xff] }
 0x11b   :  { %v1456_v62 = vadd.f32 %v1455_v59, %v1454_v54  ;;  %v1717_v63 = vadd.f32 %v1716_v60, %v1715_v55  ;;  %v108_v60 = vld [vmem:[%s3323_s0 + $0x2b0] sm:$0xff] }
 0x11c   :  { %v1459_v13 = vsel %vm1303_vm0, %v1125_v0, 0.0  ;;  %v1720_v14 = vsel %vm1303_vm0, %v1253_v1, 0.0  ;;  %v1461_v20 = vsel %vm1303_vm0, %v1126_v4, 0.0  ;;  %v1722_v21 = vsel %vm1303_vm0, %v1254_v5, 0.0  ;;  %v109_v1 = vld [vmem:[%s3323_s0 + $0x2b8] sm:$0xff] }
 0x11d   :  { %v1458_v8 = vadd.f32 %v1457_v2, %v1456_v62  ;;  %v1719_v9 = vadd.f32 %v1718_v3, %v1717_v63  ;;  %v815_v10 = vpop.permute.xlu1 %814  ;;  %v810_v15 = vpop.permute.xlu0 %809  ;;  %v237_v2 = vld [vmem:[%s3323_s0 + $0x6b8] sm:$0xff] }
 0x11e   :  { %v1127_v18 = vmul.f32 %v810_v15, %v102_v6  ;;  %v1255_v19 = vmul.f32 %v810_v15, %v230_v7  ;;  %v1128_v22 = vmul.f32 %v815_v10, %v103_v11  ;;  %v1256_v23 = vmul.f32 %v815_v10, %v231_v12  ;;  %v238_v15 = vld [vmem:[%s3323_s0 + $0x6c0] sm:$0xff] }
 0x11f   :  { %v1460_v16 = vadd.f32 %v1459_v13, %v1458_v8  ;;  %v1721_v17 = vadd.f32 %v1720_v14, %v1719_v9  ;;  %v110_v14 = vld [vmem:[%s3323_s0 + $0x2c0] sm:$0xff] }
 0x120   :  { %v1463_v31 = vsel %vm1303_vm0, %v1127_v18, 0.0  ;;  %v1724_v32 = vsel %vm1303_vm0, %v1255_v19, 0.0  ;;  %v1465_v38 = vsel %vm1303_vm0, %v1128_v22, 0.0  ;;  %v1726_v39 = vsel %vm1303_vm0, %v1256_v23, 0.0  ;;  %v111_v19 = vld [vmem:[%s3323_s0 + $0x2c8] sm:$0xff] }
 0x121   :  { %v1462_v26 = vadd.f32 %v1461_v20, %v1460_v16  ;;  %v1723_v27 = vadd.f32 %v1722_v21, %v1721_v17  ;;  %v825_v28 = vpop.permute.xlu1 %824  ;;  %v820_v33 = vpop.permute.xlu0 %819  ;;  %v239_v20 = vld [vmem:[%s3323_s0 + $0x6c8] sm:$0xff] }
 0x122   :  { %v1129_v36 = vmul.f32 %v820_v33, %v104_v24  ;;  %v1257_v37 = vmul.f32 %v820_v33, %v232_v25  ;;  %v1130_v40 = vmul.f32 %v825_v28, %v105_v29  ;;  %v1258_v41 = vmul.f32 %v825_v28, %v233_v30  ;;  %v240_v33 = vld [vmem:[%s3323_s0 + $0x6d0] sm:$0xff] }
 0x123   :  { %v1464_v34 = vadd.f32 %v1463_v31, %v1462_v26  ;;  %v1725_v35 = vadd.f32 %v1724_v32, %v1723_v27  ;;  %v112_v32 = vld [vmem:[%s3323_s0 + $0x2d0] sm:$0xff] }
 0x124   :  { %v1467_v49 = vsel %vm1303_vm0, %v1129_v36, 0.0  ;;  %v1728_v50 = vsel %vm1303_vm0, %v1257_v37, 0.0  ;;  %v1469_v56 = vsel %vm1303_vm0, %v1130_v40, 0.0  ;;  %v1730_v57 = vsel %vm1303_vm0, %v1258_v41, 0.0  ;;  %v113_v37 = vld [vmem:[%s3323_s0 + $0x2d8] sm:$0xff] }
 0x125   :  { %v1466_v44 = vadd.f32 %v1465_v38, %v1464_v34  ;;  %v1727_v45 = vadd.f32 %v1726_v39, %v1725_v35  ;;  %v835_v46 = vpop.permute.xlu1 %834  ;;  %v830_v51 = vpop.permute.xlu0 %829  ;;  %v241_v38 = vld [vmem:[%s3323_s0 + $0x6d8] sm:$0xff] }
 0x126   :  { %v1131_v54 = vmul.f32 %v830_v51, %v106_v42  ;;  %v1259_v55 = vmul.f32 %v830_v51, %v234_v43  ;;  %v1132_v58 = vmul.f32 %v835_v46, %v107_v47  ;;  %v1260_v59 = vmul.f32 %v835_v46, %v235_v48  ;;  %v242_v51 = vld [vmem:[%s3323_s0 + $0x6e0] sm:$0xff] }
 0x127   :  { %v1468_v52 = vadd.f32 %v1467_v49, %v1466_v44  ;;  %v1729_v53 = vadd.f32 %v1728_v50, %v1727_v45  ;;  %v114_v50 = vld [vmem:[%s3323_s0 + $0x2e0] sm:$0xff] }
 0x128   :  { %v1471_v3 = vsel %vm1303_vm0, %v1131_v54, 0.0  ;;  %v1732_v4 = vsel %vm1303_vm0, %v1259_v55, 0.0  ;;  %v1473_v10 = vsel %vm1303_vm0, %v1132_v58, 0.0  ;;  %v1734_v11 = vsel %vm1303_vm0, %v1260_v59, 0.0  ;;  %v115_v55 = vld [vmem:[%s3323_s0 + $0x2e8] sm:$0xff] }
 0x129   :  { %v1470_v62 = vadd.f32 %v1469_v56, %v1468_v52  ;;  %v1731_v63 = vadd.f32 %v1730_v57, %v1729_v53  ;;  %v845_v0 = vpop.permute.xlu1 %844  ;;  %v840_v5 = vpop.permute.xlu0 %839  ;;  %v243_v56 = vld [vmem:[%s3323_s0 + $0x6e8] sm:$0xff] }
 0x12a   :  { %v1133_v8 = vmul.f32 %v840_v5, %v108_v60  ;;  %v1261_v9 = vmul.f32 %v840_v5, %v236_v61  ;;  %v1134_v12 = vmul.f32 %v845_v0, %v109_v1  ;;  %v1262_v13 = vmul.f32 %v845_v0, %v237_v2  ;;  %v244_v5 = vld [vmem:[%s3323_s0 + $0x6f0] sm:$0xff] }
 0x12b   :  { %v1472_v6 = vadd.f32 %v1471_v3, %v1470_v62  ;;  %v1733_v7 = vadd.f32 %v1732_v4, %v1731_v63  ;;  %v116_v4 = vld [vmem:[%s3323_s0 + $0x2f0] sm:$0xff] }
 0x12c   :  { %v1475_v21 = vsel %vm1303_vm0, %v1133_v8, 0.0  ;;  %v1736_v22 = vsel %vm1303_vm0, %v1261_v9, 0.0  ;;  %v1477_v28 = vsel %vm1303_vm0, %v1134_v12, 0.0  ;;  %v1738_v29 = vsel %vm1303_vm0, %v1262_v13, 0.0  ;;  %v117_v9 = vld [vmem:[%s3323_s0 + $0x2f8] sm:$0xff] }
 0x12d   :  { %v1474_v16 = vadd.f32 %v1473_v10, %v1472_v6  ;;  %v1735_v17 = vadd.f32 %v1734_v11, %v1733_v7  ;;  %v855_v18 = vpop.permute.xlu1 %854  ;;  %v850_v23 = vpop.permute.xlu0 %849  ;;  %v245_v10 = vld [vmem:[%s3323_s0 + $0x6f8] sm:$0xff] }
 0x12e   :  { %v1135_v26 = vmul.f32 %v850_v23, %v110_v14  ;;  %v1263_v27 = vmul.f32 %v850_v23, %v238_v15  ;;  %v1136_v30 = vmul.f32 %v855_v18, %v111_v19  ;;  %v1264_v31 = vmul.f32 %v855_v18, %v239_v20  ;;  %v246_v23 = vld [vmem:[%s3323_s0 + $0x700] sm:$0xff] }
 0x12f   :  { %v1476_v24 = vadd.f32 %v1475_v21, %v1474_v16  ;;  %v1737_v25 = vadd.f32 %v1736_v22, %v1735_v17  ;;  %v118_v22 = vld [vmem:[%s3323_s0 + $0x300] sm:$0xff] }
 0x130   :  { %v1479_v39 = vsel %vm1303_vm0, %v1135_v26, 0.0  ;;  %v1740_v40 = vsel %vm1303_vm0, %v1263_v27, 0.0  ;;  %v1481_v46 = vsel %vm1303_vm0, %v1136_v30, 0.0  ;;  %v1742_v47 = vsel %vm1303_vm0, %v1264_v31, 0.0  ;;  %v119_v27 = vld [vmem:[%s3323_s0 + $0x308] sm:$0xff] }
 0x131   :  { %v1478_v34 = vadd.f32 %v1477_v28, %v1476_v24  ;;  %v1739_v35 = vadd.f32 %v1738_v29, %v1737_v25  ;;  %v865_v36 = vpop.permute.xlu1 %864  ;;  %v860_v41 = vpop.permute.xlu0 %859  ;;  %v247_v28 = vld [vmem:[%s3323_s0 + $0x708] sm:$0xff] }
 0x132   :  { %v1137_v44 = vmul.f32 %v860_v41, %v112_v32  ;;  %v1265_v45 = vmul.f32 %v860_v41, %v240_v33  ;;  %v1138_v48 = vmul.f32 %v865_v36, %v113_v37  ;;  %v1266_v49 = vmul.f32 %v865_v36, %v241_v38  ;;  %v248_v41 = vld [vmem:[%s3323_s0 + $0x710] sm:$0xff] }
 0x133   :  { %v1480_v42 = vadd.f32 %v1479_v39, %v1478_v34  ;;  %v1741_v43 = vadd.f32 %v1740_v40, %v1739_v35  ;;  %v120_v40 = vld [vmem:[%s3323_s0 + $0x310] sm:$0xff] }
 0x134   :  { %v1483_v57 = vsel %vm1303_vm0, %v1137_v44, 0.0  ;;  %v1744_v58 = vsel %vm1303_vm0, %v1265_v45, 0.0  ;;  %v1485_v0 = vsel %vm1303_vm0, %v1138_v48, 0.0  ;;  %v1746_v1 = vsel %vm1303_vm0, %v1266_v49, 0.0  ;;  %v121_v45 = vld [vmem:[%s3323_s0 + $0x318] sm:$0xff] }
 0x135   :  { %v1482_v52 = vadd.f32 %v1481_v46, %v1480_v42  ;;  %v1743_v53 = vadd.f32 %v1742_v47, %v1741_v43  ;;  %v875_v54 = vpop.permute.xlu1 %874  ;;  %v870_v59 = vpop.permute.xlu0 %869  ;;  %v249_v46 = vld [vmem:[%s3323_s0 + $0x718] sm:$0xff] }
 0x136   :  { %v1139_v62 = vmul.f32 %v870_v59, %v114_v50  ;;  %v1267_v63 = vmul.f32 %v870_v59, %v242_v51  ;;  %v1140_v2 = vmul.f32 %v875_v54, %v115_v55  ;;  %v1268_v3 = vmul.f32 %v875_v54, %v243_v56  ;;  %v250_v59 = vld [vmem:[%s3323_s0 + $0x720] sm:$0xff] }
 0x137   :  { %v1484_v60 = vadd.f32 %v1483_v57, %v1482_v52  ;;  %v1745_v61 = vadd.f32 %v1744_v58, %v1743_v53  ;;  %v122_v58 = vld [vmem:[%s3323_s0 + $0x320] sm:$0xff] }
 0x138   :  { %v1487_v11 = vsel %vm1303_vm0, %v1139_v62, 0.0  ;;  %v1748_v12 = vsel %vm1303_vm0, %v1267_v63, 0.0  ;;  %v1489_v18 = vsel %vm1303_vm0, %v1140_v2, 0.0  ;;  %v1750_v19 = vsel %vm1303_vm0, %v1268_v3, 0.0  ;;  %v123_v63 = vld [vmem:[%s3323_s0 + $0x328] sm:$0xff] }
 0x139   :  { %v1486_v6 = vadd.f32 %v1485_v0, %v1484_v60  ;;  %v1747_v7 = vadd.f32 %v1746_v1, %v1745_v61  ;;  %v885_v8 = vpop.permute.xlu1 %884  ;;  %v880_v13 = vpop.permute.xlu0 %879  ;;  %v251_v0 = vld [vmem:[%s3323_s0 + $0x728] sm:$0xff] }
 0x13a   :  { %v1141_v16 = vmul.f32 %v880_v13, %v116_v4  ;;  %v1269_v17 = vmul.f32 %v880_v13, %v244_v5  ;;  %v1142_v20 = vmul.f32 %v885_v8, %v117_v9  ;;  %v1270_v21 = vmul.f32 %v885_v8, %v245_v10  ;;  %v252_v13 = vld [vmem:[%s3323_s0 + $0x730] sm:$0xff] }
 0x13b   :  { %v1488_v14 = vadd.f32 %v1487_v11, %v1486_v6  ;;  %v1749_v15 = vadd.f32 %v1748_v12, %v1747_v7  ;;  %v124_v12 = vld [vmem:[%s3323_s0 + $0x330] sm:$0xff] }
 0x13c   :  { %v1491_v29 = vsel %vm1303_vm0, %v1141_v16, 0.0  ;;  %v1752_v30 = vsel %vm1303_vm0, %v1269_v17, 0.0  ;;  %v1493_v36 = vsel %vm1303_vm0, %v1142_v20, 0.0  ;;  %v1754_v37 = vsel %vm1303_vm0, %v1270_v21, 0.0  ;;  %v125_v17 = vld [vmem:[%s3323_s0 + $0x338] sm:$0xff] }
 0x13d   :  { %v1490_v24 = vadd.f32 %v1489_v18, %v1488_v14  ;;  %v1751_v25 = vadd.f32 %v1750_v19, %v1749_v15  ;;  %v895_v26 = vpop.permute.xlu1 %894  ;;  %v890_v31 = vpop.permute.xlu0 %889  ;;  %v253_v18 = vld [vmem:[%s3323_s0 + $0x738] sm:$0xff] }
 0x13e   :  { %v1143_v34 = vmul.f32 %v890_v31, %v118_v22  ;;  %v1271_v35 = vmul.f32 %v890_v31, %v246_v23  ;;  %v1144_v38 = vmul.f32 %v895_v26, %v119_v27  ;;  %v1272_v39 = vmul.f32 %v895_v26, %v247_v28  ;;  %v254_v31 = vld [vmem:[%s3323_s0 + $0x740] sm:$0xff] }
 0x13f   :  { %v1492_v32 = vadd.f32 %v1491_v29, %v1490_v24  ;;  %v1753_v33 = vadd.f32 %v1752_v30, %v1751_v25  ;;  %v126_v30 = vld [vmem:[%s3323_s0 + $0x340] sm:$0xff] }
 0x140   :  { %v1495_v47 = vsel %vm1303_vm0, %v1143_v34, 0.0  ;;  %v1756_v48 = vsel %vm1303_vm0, %v1271_v35, 0.0  ;;  %v1497_v54 = vsel %vm1303_vm0, %v1144_v38, 0.0  ;;  %v1758_v55 = vsel %vm1303_vm0, %v1272_v39, 0.0  ;;  %v127_v35 = vld [vmem:[%s3323_s0 + $0x348] sm:$0xff] }
 0x141   :  { %v1494_v42 = vadd.f32 %v1493_v36, %v1492_v32  ;;  %v1755_v43 = vadd.f32 %v1754_v37, %v1753_v33  ;;  %v905_v44 = vpop.permute.xlu1 %904  ;;  %v900_v49 = vpop.permute.xlu0 %899  ;;  %v255_v36 = vld [vmem:[%s3323_s0 + $0x748] sm:$0xff] }
 0x142   :  { %v1145_v52 = vmul.f32 %v900_v49, %v120_v40  ;;  %v1273_v53 = vmul.f32 %v900_v49, %v248_v41  ;;  %v1146_v56 = vmul.f32 %v905_v44, %v121_v45  ;;  %v1274_v57 = vmul.f32 %v905_v44, %v249_v46  ;;  %v256_v49 = vld [vmem:[%s3323_s0 + $0x750] sm:$0xff] }
 0x143   :  { %v1496_v50 = vadd.f32 %v1495_v47, %v1494_v42  ;;  %v1757_v51 = vadd.f32 %v1756_v48, %v1755_v43  ;;  %v128_v48 = vld [vmem:[%s3323_s0 + $0x350] sm:$0xff] }
 0x144   :  { %v1499_v1 = vsel %vm1303_vm0, %v1145_v52, 0.0  ;;  %v1760_v2 = vsel %vm1303_vm0, %v1273_v53, 0.0  ;;  %v1501_v8 = vsel %vm1303_vm0, %v1146_v56, 0.0  ;;  %v1762_v9 = vsel %vm1303_vm0, %v1274_v57, 0.0  ;;  %v129_v53 = vld [vmem:[%s3323_s0 + $0x358] sm:$0xff] }
 0x145   :  { %v1498_v60 = vadd.f32 %v1497_v54, %v1496_v50  ;;  %v1759_v61 = vadd.f32 %v1758_v55, %v1757_v51  ;;  %v915_v62 = vpop.permute.xlu1 %914  ;;  %v910_v3 = vpop.permute.xlu0 %909  ;;  %v257_v54 = vld [vmem:[%s3323_s0 + $0x758] sm:$0xff] }
 0x146   :  { %v1147_v6 = vmul.f32 %v910_v3, %v122_v58  ;;  %v1275_v7 = vmul.f32 %v910_v3, %v250_v59  ;;  %v1148_v10 = vmul.f32 %v915_v62, %v123_v63  ;;  %v1276_v11 = vmul.f32 %v915_v62, %v251_v0  ;;  %v258_v3 = vld [vmem:[%s3323_s0 + $0x760] sm:$0xff] }
 0x147   :  { %v1500_v4 = vadd.f32 %v1499_v1, %v1498_v60  ;;  %v1761_v5 = vadd.f32 %v1760_v2, %v1759_v61  ;;  %v130_v2 = vld [vmem:[%s3323_s0 + $0x360] sm:$0xff] }
 0x148   :  { %v1503_v19 = vsel %vm1303_vm0, %v1147_v6, 0.0  ;;  %v1764_v20 = vsel %vm1303_vm0, %v1275_v7, 0.0  ;;  %v1505_v26 = vsel %vm1303_vm0, %v1148_v10, 0.0  ;;  %v1766_v27 = vsel %vm1303_vm0, %v1276_v11, 0.0  ;;  %v131_v7 = vld [vmem:[%s3323_s0 + $0x368] sm:$0xff] }
 0x149   :  { %v1502_v14 = vadd.f32 %v1501_v8, %v1500_v4  ;;  %v1763_v15 = vadd.f32 %v1762_v9, %v1761_v5  ;;  %v925_v16 = vpop.permute.xlu1 %924  ;;  %v920_v21 = vpop.permute.xlu0 %919  ;;  %v259_v8 = vld [vmem:[%s3323_s0 + $0x768] sm:$0xff] }
 0x14a   :  { %v1149_v24 = vmul.f32 %v920_v21, %v124_v12  ;;  %v1277_v25 = vmul.f32 %v920_v21, %v252_v13  ;;  %v1150_v28 = vmul.f32 %v925_v16, %v125_v17  ;;  %v1278_v29 = vmul.f32 %v925_v16, %v253_v18  ;;  %v260_v21 = vld [vmem:[%s3323_s0 + $0x770] sm:$0xff] }
 0x14b   :  { %v1504_v22 = vadd.f32 %v1503_v19, %v1502_v14  ;;  %v1765_v23 = vadd.f32 %v1764_v20, %v1763_v15  ;;  %v132_v20 = vld [vmem:[%s3323_s0 + $0x370] sm:$0xff] }
 0x14c   :  { %v1507_v37 = vsel %vm1303_vm0, %v1149_v24, 0.0  ;;  %v1768_v38 = vsel %vm1303_vm0, %v1277_v25, 0.0  ;;  %v1509_v44 = vsel %vm1303_vm0, %v1150_v28, 0.0  ;;  %v1770_v45 = vsel %vm1303_vm0, %v1278_v29, 0.0  ;;  %v133_v25 = vld [vmem:[%s3323_s0 + $0x378] sm:$0xff] }
 0x14d   :  { %v1506_v32 = vadd.f32 %v1505_v26, %v1504_v22  ;;  %v1767_v33 = vadd.f32 %v1766_v27, %v1765_v23  ;;  %v935_v34 = vpop.permute.xlu1 %934  ;;  %v930_v39 = vpop.permute.xlu0 %929  ;;  %v261_v26 = vld [vmem:[%s3323_s0 + $0x778] sm:$0xff] }
 0x14e   :  { %v1151_v42 = vmul.f32 %v930_v39, %v126_v30  ;;  %v1279_v43 = vmul.f32 %v930_v39, %v254_v31  ;;  %v1152_v46 = vmul.f32 %v935_v34, %v127_v35  ;;  %v1280_v47 = vmul.f32 %v935_v34, %v255_v36  ;;  %v262_v39 = vld [vmem:[%s3323_s0 + $0x780] sm:$0xff] }
 0x14f   :  { %v1508_v40 = vadd.f32 %v1507_v37, %v1506_v32  ;;  %v1769_v41 = vadd.f32 %v1768_v38, %v1767_v33  ;;  %v134_v38 = vld [vmem:[%s3323_s0 + $0x380] sm:$0xff] }
 0x150   :  { %v1511_v55 = vsel %vm1303_vm0, %v1151_v42, 0.0  ;;  %v1772_v56 = vsel %vm1303_vm0, %v1279_v43, 0.0  ;;  %v1513_v62 = vsel %vm1303_vm0, %v1152_v46, 0.0  ;;  %v1774_v63 = vsel %vm1303_vm0, %v1280_v47, 0.0  ;;  %v135_v43 = vld [vmem:[%s3323_s0 + $0x388] sm:$0xff] }
 0x151   :  { %v1510_v50 = vadd.f32 %v1509_v44, %v1508_v40  ;;  %v1771_v51 = vadd.f32 %v1770_v45, %v1769_v41  ;;  %v945_v52 = vpop.permute.xlu1 %944  ;;  %v940_v57 = vpop.permute.xlu0 %939  ;;  %v263_v44 = vld [vmem:[%s3323_s0 + $0x788] sm:$0xff] }
 0x152   :  { %v1153_v60 = vmul.f32 %v940_v57, %v128_v48  ;;  %v1281_v61 = vmul.f32 %v940_v57, %v256_v49  ;;  %v1154_v0 = vmul.f32 %v945_v52, %v129_v53  ;;  %v1282_v1 = vmul.f32 %v945_v52, %v257_v54  ;;  %v264_v57 = vld [vmem:[%s3323_s0 + $0x790] sm:$0xff] }
 0x153   :  { %v1512_v58 = vadd.f32 %v1511_v55, %v1510_v50  ;;  %v1773_v59 = vadd.f32 %v1772_v56, %v1771_v51  ;;  %v136_v56 = vld [vmem:[%s3323_s0 + $0x390] sm:$0xff] }
 0x154   :  { %v1515_v9 = vsel %vm1303_vm0, %v1153_v60, 0.0  ;;  %v1776_v10 = vsel %vm1303_vm0, %v1281_v61, 0.0  ;;  %v1517_v16 = vsel %vm1303_vm0, %v1154_v0, 0.0  ;;  %v1778_v17 = vsel %vm1303_vm0, %v1282_v1, 0.0  ;;  %v137_v61 = vld [vmem:[%s3323_s0 + $0x398] sm:$0xff] }
 0x155   :  { %v1514_v4 = vadd.f32 %v1513_v62, %v1512_v58  ;;  %v1775_v5 = vadd.f32 %v1774_v63, %v1773_v59  ;;  %v955_v6 = vpop.permute.xlu1 %954  ;;  %v950_v11 = vpop.permute.xlu0 %949  ;;  %v265_v62 = vld [vmem:[%s3323_s0 + $0x798] sm:$0xff] }
 0x156   :  { %v1155_v14 = vmul.f32 %v950_v11, %v130_v2  ;;  %v1283_v15 = vmul.f32 %v950_v11, %v258_v3  ;;  %v1156_v18 = vmul.f32 %v955_v6, %v131_v7  ;;  %v1284_v19 = vmul.f32 %v955_v6, %v259_v8  ;;  %v266_v11 = vld [vmem:[%s3323_s0 + $0x7a0] sm:$0xff] }
 0x157   :  { %v1516_v12 = vadd.f32 %v1515_v9, %v1514_v4  ;;  %v1777_v13 = vadd.f32 %v1776_v10, %v1775_v5  ;;  %v138_v10 = vld [vmem:[%s3323_s0 + $0x3a0] sm:$0xff] }
 0x158   :  { %v1519_v27 = vsel %vm1303_vm0, %v1155_v14, 0.0  ;;  %v1780_v28 = vsel %vm1303_vm0, %v1283_v15, 0.0  ;;  %v1521_v34 = vsel %vm1303_vm0, %v1156_v18, 0.0  ;;  %v1782_v35 = vsel %vm1303_vm0, %v1284_v19, 0.0  ;;  %v139_v15 = vld [vmem:[%s3323_s0 + $0x3a8] sm:$0xff] }
 0x159   :  { %v1518_v22 = vadd.f32 %v1517_v16, %v1516_v12  ;;  %v1779_v23 = vadd.f32 %v1778_v17, %v1777_v13  ;;  %v965_v24 = vpop.permute.xlu1 %964  ;;  %v960_v29 = vpop.permute.xlu0 %959  ;;  %v267_v16 = vld [vmem:[%s3323_s0 + $0x7a8] sm:$0xff] }
 0x15a   :  { %v1157_v32 = vmul.f32 %v960_v29, %v132_v20  ;;  %v1285_v33 = vmul.f32 %v960_v29, %v260_v21  ;;  %v1158_v36 = vmul.f32 %v965_v24, %v133_v25  ;;  %v1286_v37 = vmul.f32 %v965_v24, %v261_v26  ;;  %v268_v29 = vld [vmem:[%s3323_s0 + $0x7b0] sm:$0xff] }
 0x15b   :  { %v1520_v30 = vadd.f32 %v1519_v27, %v1518_v22  ;;  %v1781_v31 = vadd.f32 %v1780_v28, %v1779_v23  ;;  %v140_v28 = vld [vmem:[%s3323_s0 + $0x3b0] sm:$0xff] }
 0x15c   :  { %v1523_v45 = vsel %vm1303_vm0, %v1157_v32, 0.0  ;;  %v1784_v46 = vsel %vm1303_vm0, %v1285_v33, 0.0  ;;  %v1525_v52 = vsel %vm1303_vm0, %v1158_v36, 0.0  ;;  %v1786_v53 = vsel %vm1303_vm0, %v1286_v37, 0.0  ;;  %v141_v33 = vld [vmem:[%s3323_s0 + $0x3b8] sm:$0xff] }
 0x15d   :  { %v1522_v40 = vadd.f32 %v1521_v34, %v1520_v30  ;;  %v1783_v41 = vadd.f32 %v1782_v35, %v1781_v31  ;;  %v975_v42 = vpop.permute.xlu1 %974  ;;  %v970_v47 = vpop.permute.xlu0 %969  ;;  %v269_v34 = vld [vmem:[%s3323_s0 + $0x7b8] sm:$0xff] }
 0x15e   :  { %v1159_v50 = vmul.f32 %v970_v47, %v134_v38  ;;  %v1287_v51 = vmul.f32 %v970_v47, %v262_v39  ;;  %v1160_v54 = vmul.f32 %v975_v42, %v135_v43  ;;  %v1288_v55 = vmul.f32 %v975_v42, %v263_v44  ;;  %v270_v47 = vld [vmem:[%s3323_s0 + $0x7c0] sm:$0xff] }
 0x15f   :  { %v1524_v48 = vadd.f32 %v1523_v45, %v1522_v40  ;;  %v1785_v49 = vadd.f32 %v1784_v46, %v1783_v41  ;;  %v142_v46 = vld [vmem:[%s3323_s0 + $0x3c0] sm:$0xff] }
 0x160   :  { %v1527_v63 = vsel %vm1303_vm0, %v1159_v50, 0.0  ;;  %v1788_v0 = vsel %vm1303_vm0, %v1287_v51, 0.0  ;;  %v1529_v6 = vsel %vm1303_vm0, %v1160_v54, 0.0  ;;  %v1790_v7 = vsel %vm1303_vm0, %v1288_v55, 0.0  ;;  %v143_v51 = vld [vmem:[%s3323_s0 + $0x3c8] sm:$0xff] }
 0x161   :  { %v1526_v58 = vadd.f32 %v1525_v52, %v1524_v48  ;;  %v1787_v59 = vadd.f32 %v1786_v53, %v1785_v49  ;;  %v985_v60 = vpop.permute.xlu1 %984  ;;  %v980_v1 = vpop.permute.xlu0 %979  ;;  %v271_v52 = vld [vmem:[%s3323_s0 + $0x7c8] sm:$0xff] }
 0x162   :  { %v1161_v4 = vmul.f32 %v980_v1, %v136_v56  ;;  %v1289_v5 = vmul.f32 %v980_v1, %v264_v57  ;;  %v1162_v8 = vmul.f32 %v985_v60, %v137_v61  ;;  %v1290_v9 = vmul.f32 %v985_v60, %v265_v62  ;;  %v272_v1 = vld [vmem:[%s3323_s0 + $0x7d0] sm:$0xff] }
 0x163   :  { %v1528_v2 = vadd.f32 %v1527_v63, %v1526_v58  ;;  %v1789_v3 = vadd.f32 %v1788_v0, %v1787_v59  ;;  %v144_v0 = vld [vmem:[%s3323_s0 + $0x3d0] sm:$0xff] }
 0x164   :  { %v1531_v17 = vsel %vm1303_vm0, %v1161_v4, 0.0  ;;  %v1792_v18 = vsel %vm1303_vm0, %v1289_v5, 0.0  ;;  %v1533_v24 = vsel %vm1303_vm0, %v1162_v8, 0.0  ;;  %v1794_v25 = vsel %vm1303_vm0, %v1290_v9, 0.0  ;;  %v145_v5 = vld [vmem:[%s3323_s0 + $0x3d8] sm:$0xff] }
 0x165   :  { %v1530_v12 = vadd.f32 %v1529_v6, %v1528_v2  ;;  %v1791_v13 = vadd.f32 %v1790_v7, %v1789_v3  ;;  %v995_v14 = vpop.permute.xlu1 %994  ;;  %v990_v19 = vpop.permute.xlu0 %989  ;;  %v273_v6 = vld [vmem:[%s3323_s0 + $0x7d8] sm:$0xff] }
 0x166   :  { %v1163_v22 = vmul.f32 %v990_v19, %v138_v10  ;;  %v1291_v23 = vmul.f32 %v990_v19, %v266_v11  ;;  %v1164_v26 = vmul.f32 %v995_v14, %v139_v15  ;;  %v1292_v27 = vmul.f32 %v995_v14, %v267_v16  ;;  %v274_v19 = vld [vmem:[%s3323_s0 + $0x7e0] sm:$0xff] }
 0x167   :  { %v1532_v20 = vadd.f32 %v1531_v17, %v1530_v12  ;;  %v1793_v21 = vadd.f32 %v1792_v18, %v1791_v13  ;;  %v146_v18 = vld [vmem:[%s3323_s0 + $0x3e0] sm:$0xff] }
 0x168   :  { %v1535_v35 = vsel %vm1303_vm0, %v1163_v22, 0.0  ;;  %v1796_v36 = vsel %vm1303_vm0, %v1291_v23, 0.0  ;;  %v1537_v42 = vsel %vm1303_vm0, %v1164_v26, 0.0  ;;  %v1798_v43 = vsel %vm1303_vm0, %v1292_v27, 0.0  ;;  %v147_v23 = vld [vmem:[%s3323_s0 + $0x3e8] sm:$0xff] }
 0x169   :  { %v1534_v30 = vadd.f32 %v1533_v24, %v1532_v20  ;;  %v1795_v31 = vadd.f32 %v1794_v25, %v1793_v21  ;;  %v1005_v32 = vpop.permute.xlu1 %1004  ;;  %v1000_v37 = vpop.permute.xlu0 %999  ;;  %v275_v24 = vld [vmem:[%s3323_s0 + $0x7e8] sm:$0xff] }
 0x16a   :  { %v1165_v40 = vmul.f32 %v1000_v37, %v140_v28  ;;  %v1293_v41 = vmul.f32 %v1000_v37, %v268_v29  ;;  %v1166_v44 = vmul.f32 %v1005_v32, %v141_v33  ;;  %v1294_v45 = vmul.f32 %v1005_v32, %v269_v34  ;;  %v276_v37 = vld [vmem:[%s3323_s0 + $0x7f0] sm:$0xff] }
 0x16b   :  { %v1536_v38 = vadd.f32 %v1535_v35, %v1534_v30  ;;  %v1797_v39 = vadd.f32 %v1796_v36, %v1795_v31  ;;  %v148_v36 = vld [vmem:[%s3323_s0 + $0x3f0] sm:$0xff] }
 0x16c   :  { %v1539_v53 = vsel %vm1303_vm0, %v1165_v40, 0.0  ;;  %v1800_v54 = vsel %vm1303_vm0, %v1293_v41, 0.0  ;;  %v1541_v60 = vsel %vm1303_vm0, %v1166_v44, 0.0  ;;  %v1802_v61 = vsel %vm1303_vm0, %v1294_v45, 0.0  ;;  %v149_v41 = vld [vmem:[%s3323_s0 + $0x3f8] sm:$0xff] }
 0x16d   :  { %v1538_v48 = vadd.f32 %v1537_v42, %v1536_v38  ;;  %v1799_v49 = vadd.f32 %v1798_v43, %v1797_v39  ;;  %v1015_v50 = vpop.permute.xlu1 %1014  ;;  %v1010_v55 = vpop.permute.xlu0 %1009  ;;  %v277_v42 = vld [vmem:[%s3323_s0 + $0x7f8] sm:$0xff] }
 0x16e   :  { %v1167_v58 = vmul.f32 %v1010_v55, %v142_v46  ;;  %v1295_v59 = vmul.f32 %v1010_v55, %v270_v47  ;;  %v1168_v62 = vmul.f32 %v1015_v50, %v143_v51  ;;  %v1296_v63 = vmul.f32 %v1015_v50, %v271_v52 }
 0x16f   :  { %v1540_v56 = vadd.f32 %v1539_v53, %v1538_v48  ;;  %v1801_v57 = vadd.f32 %v1800_v54, %v1799_v49 }
 0x170   :  { %v1543_v7 = vsel %vm1303_vm0, %v1167_v58, 0.0  ;;  %v1804_v8 = vsel %vm1303_vm0, %v1295_v59, 0.0  ;;  %v1545_v14 = vsel %vm1303_vm0, %v1168_v62, 0.0  ;;  %v1806_v15 = vsel %vm1303_vm0, %v1296_v63, 0.0 }
 0x171   :  { %v1542_v2 = vadd.f32 %v1541_v60, %v1540_v56  ;;  %v1803_v3 = vadd.f32 %v1802_v61, %v1801_v57  ;;  %v1025_v4 = vpop.permute.xlu1 %1024  ;;  %v1020_v9 = vpop.permute.xlu0 %1019 }
 0x172   :  { %v1169_v12 = vmul.f32 %v1020_v9, %v144_v0  ;;  %v1297_v13 = vmul.f32 %v1020_v9, %v272_v1  ;;  %v1170_v16 = vmul.f32 %v1025_v4, %v145_v5  ;;  %v1298_v17 = vmul.f32 %v1025_v4, %v273_v6 }
 0x173   :  { %v1544_v10 = vadd.f32 %v1543_v7, %v1542_v2  ;;  %v1805_v11 = vadd.f32 %v1804_v8, %v1803_v3 }
 0x174   :  { %v1547_v25 = vsel %vm1303_vm0, %v1169_v12, 0.0  ;;  %v1808_v26 = vsel %vm1303_vm0, %v1297_v13, 0.0  ;;  %v1549_v32 = vsel %vm1303_vm0, %v1170_v16, 0.0  ;;  %v1810_v33 = vsel %vm1303_vm0, %v1298_v17, 0.0  ;;  %v406_v12 = vld [vmem:[#allocation2] sm:$0x3] }
 0x175   :  { %v1546_v20 = vadd.f32 %v1545_v14, %v1544_v10  ;;  %v1807_v21 = vadd.f32 %v1806_v15, %v1805_v11  ;;  %v1035_v22 = vpop.permute.xlu1 %1034  ;;  %v1030_v27 = vpop.permute.xlu0 %1029  ;;  %v1839_v15 = vstv %s3325_s2 }
 0x176   :  { %v1171_v30 = vmul.f32 %v1030_v27, %v146_v18  ;;  %v1299_v31 = vmul.f32 %v1030_v27, %v274_v19  ;;  %v1172_v34 = vmul.f32 %v1035_v22, %v147_v23  ;;  %v1300_v35 = vmul.f32 %v1035_v22, %v275_v24 }
 0x177   :  { %v1548_v28 = vadd.f32 %v1547_v25, %v1546_v20  ;;  %v1809_v29 = vadd.f32 %v1808_v26, %v1807_v21 }
 0x178   :  { %v1551_v43 = vsel %vm1303_vm0, %v1171_v30, 0.0  ;;  %v1812_v44 = vsel %vm1303_vm0, %v1299_v31, 0.0  ;;  %v1553_v50 = vsel %vm1303_vm0, %v1172_v34, 0.0  ;;  %v1814_v51 = vsel %vm1303_vm0, %v1300_v35, 0.0 }
 0x179   :  { %v1550_v38 = vadd.f32 %v1549_v32, %v1548_v28  ;;  %v1811_v39 = vadd.f32 %v1810_v33, %v1809_v29  ;;  %v1045_v40 = vpop.permute.xlu1 %1044  ;;  %v1040_v45 = vpop.permute.xlu0 %1039 }
 0x17a   :  { %v1173_v48 = vmul.f32 %v1040_v45, %v148_v36  ;;  %v1301_v49 = vmul.f32 %v1040_v45, %v276_v37  ;;  %v1174_v52 = vmul.f32 %v1045_v40, %v149_v41  ;;  %v1302_v53 = vmul.f32 %v1045_v40, %v277_v42 }
 0x17b   :  { %v1552_v46 = vadd.f32 %v1551_v43, %v1550_v38  ;;  %v1813_v47 = vadd.f32 %v1812_v44, %v1811_v39 }
 0x17c   :  { %v1555_v56 = vsel %vm1303_vm0, %v1173_v48, 0.0  ;;  %v1816_v57 = vsel %vm1303_vm0, %v1301_v49, 0.0  ;;  %v1557_v60 = vsel %vm1303_vm0, %v1174_v52, 0.0  ;;  %v1818_v61 = vsel %vm1303_vm0, %v1302_v53, 0.0 }
 0x17d   :  { %v1554_v54 = vadd.f32 %v1553_v50, %v1552_v46  ;;  %v1815_v55 = vadd.f32 %v1814_v51, %v1813_v47 }
 0x17f   :  { %v1556_v58 = vadd.f32 %v1555_v56, %v1554_v54  ;;  %v1817_v59 = vadd.f32 %v1816_v57, %v1815_v55 }
 0x181   :  { %v1558_v62 = vadd.f32 %v1557_v60, %v1556_v58  ;;  %v1819_v63 = vadd.f32 %v1818_v61, %v1817_v59 }
 0x183   :  { %v1559_v0 = vrot.slane %v1558_v62, 4  ;;  %v1820_v1 = vrot.slane %v1819_v63, 4 }
 0x185   :  { %v1560_v2 = vadd.f32 %v1559_v0, %v1558_v62  ;;  %v1821_v3 = vadd.f32 %v1820_v1, %v1819_v63 }
 0x187   :  { %v1561_v4 = vrot.slane %v1560_v2, 2  ;;  %v1822_v5 = vrot.slane %v1821_v3, 2 }
 0x189   :  { %v1562_v6 = vadd.f32 %v1561_v4, %v1560_v2  ;;  %v1823_v7 = vadd.f32 %v1822_v5, %v1821_v3 }
 0x18b   :  { %v1563_v8 = vrot.slane %v1562_v6, 1  ;;  %v1824_v9 = vrot.slane %v1823_v7, 1 }
 0x18d   :  { %v1564_v10 = vadd.f32 %v1563_v8, %v1562_v6  ;;  %v1825_v11 = vadd.f32 %v1824_v9, %v1823_v7 }
 0x18f   :  { %v1829_v13 = vsel %vm1828_vm2, %v1825_v11, %v1564_v10 }
 0x190   :  { %v1831_v14 = vadd.f32 %v1829_v13, %v406_v12 }
 0x192   :  { %1833 = vst.msk [vmem:[#allocation2] sm:$0x3] %vm20_vm1, %v1831_v14 }
 0x199   :  { %v1837_v16 = vld [vmem:[#allocation2] sm:$0x3] }
 0x19a   :  { %v1840_v17 = vadd.f32 %v1839_v15, %v1837_v16 }
 0x19c   :  { %1841 = vst.msk [vmem:[#allocation4] sm:$0x3] %vm20_vm1, %v1840_v17 }
 0x19d   :  { %1872 = shalt.err (!%p1869_p4)
}
 0x19e   :  { %1851 = dma.vmem_to_hbm [thread:$0]  %s1849_s17, 32, %s3326_s3, [#allocation5]  }
 0x19f   :  { %1881 = dma.done.wait [#allocation5], 32  }
 0x1a0   :  { %1882 = vsyncadd [#allocation5], 4294967264 }
 0x1a1   :  { %1855 = vsyncpa [#allocation5], 1 }

</bundles_post_ra>
